<compile_context>
chip_gen: v5e
topology: v5e:2x2
jax: 0.10.0
libtpu: 0.0.40
codegen_flags: <defaults>
</compile_context>

<pallas_src>
import jax
import jax.numpy as jnp
from jax.experimental import pallas as pl
from jax.experimental.pallas import tpu as pltpu


def gnn_layer_kernel(h_dst_ref, h_src_ref, mask_ref, w_fc_ref, w_attn_ref,
                     out_ref, sdst_sc, m_sc, l_sc, acc_sc):
    # h_dst_ref : [Bb, Td, Din] bf16   destination-node features (this dst tile)
    # h_src_ref : [Bb, Ts, Din] bf16   source-node features (this src tile)
    # mask_ref  : [Bb, Td, Ts]  int8   adjacency block (dst-major, src on lanes)
    # w_fc_ref  : [Din, Dout]   bf16
    # w_attn_ref: [Dout, 2]     bf16   col 0 = a_src, col 1 = a_dst
    # out_ref   : [Bb, Td, Dout] bf16  resident across the src grid axis
    # scratch   : sdst/m/l [Bb,Td,1] f32, acc [Bb,Td,Dout] f32
    j = pl.program_id(2)
    bb, td, din = h_dst_ref.shape
    ts = h_src_ref.shape[1]
    dout = w_fc_ref.shape[1]

    w_fc = w_fc_ref[...]
    w_attn = w_attn_ref[...]                                            # [Dout, 2]

    @pl.when(j == 0)
    def _init():
        # z for the destination rows + their attention score, once per dst tile.
        hd = h_dst_ref[...].reshape(bb * td, din)
        zd = jnp.dot(hd, w_fc, preferred_element_type=jnp.float32)
        sd = jnp.dot(zd.astype(jnp.bfloat16), w_attn,
                     preferred_element_type=jnp.float32)[:, 1:2]        # [bb*td, 1]
        sdst_sc[...] = sd.reshape(bb, td, 1)
        m_sc[...] = jnp.full(m_sc.shape, -1e30, jnp.float32)
        l_sc[...] = jnp.zeros(l_sc.shape, jnp.float32)
        acc_sc[...] = jnp.zeros(acc_sc.shape, jnp.float32)

    # z for this src tile (shared by the attention logits and the aggregation),
    # with Bb*Ts folded into the matmul's row dim. bf16 MXU, f32 accumulate.
    hs = h_src_ref[...].reshape(bb * ts, din)
    zs = jnp.dot(hs, w_fc, preferred_element_type=jnp.float32).astype(jnp.bfloat16)
    ss = jnp.dot(zs, w_attn, preferred_element_type=jnp.float32)[:, 0:1]  # [bb*ts, 1]
    s_src = jnp.transpose(ss.reshape(bb, ts, 1), (0, 2, 1))               # [bb, 1, ts]

    # edge logits -> leaky_relu -> additive mask (-1e30 on non-edges).
    mf = mask_ref[...].astype(jnp.float32)                                # 0.0 / 1.0
    e = sdst_sc[...] + s_src                                              # [bb, td, ts]
    e = jnp.maximum(e, 0.01 * e)                                          # F.leaky_relu
    e = e + (mf - 1.0) * jnp.float32(1e30)

    # online (flash-style) masked softmax over incoming edges, f32 state.
    m_prev = m_sc[...]
    m_new = jnp.maximum(m_prev, jnp.max(e, axis=-1, keepdims=True))       # [bb, td, 1]
    p = jnp.exp(e - m_new) * mf              # multiply by mask: zero-in-degree safe
    scale = jnp.exp(m_prev - m_new)                                       # [bb, td, 1]
    l_sc[...] = scale * l_sc[...] + jnp.sum(p, axis=-1, keepdims=True)
    acc_sc[...] = scale * acc_sc[...] + jnp.einsum(
        'bds,bso->bdo', p.astype(jnp.bfloat16), zs.reshape(bb, ts, dout),
        preferred_element_type=jnp.float32)
    m_sc[...] = m_new

    @pl.when(j == pl.num_programs(2) - 1)
    def _finalize():
        denom = l_sc[...]
        inv = pl.reciprocal(jnp.where(denom > 0, denom, jnp.float32(1.0)),
                            approx=True)
        out_ref[...] = (acc_sc[...] * inv).astype(out_ref.dtype)


def _round_up(x, m):
    return m * pl.cdiv(x, m)


def gnn_layer_forward(h, mask, w_fc, w_attn, *, tile_n=256,
                      graphs_budget_bytes=12 * 1024 * 1024):
    """GNNLayer.forward for a batch of B same-sized graphs.

    h      : [B, N, in_dim]    float32 (or bf16)
    mask   : [B, N, N]         int8 preferred (any dtype accepted),
                               mask[b, dst, src] != 0 iff edge src->dst
    w_fc   : [out_dim, in_dim] float32 (PyTorch nn.Linear layout, bias=False)
    w_attn : [1, 2*out_dim]    float32 (PyTorch attn_fc layout, bias=False)
    returns: [B, N, out_dim]   bfloat16
    """
    B, N, din = h.shape
    dout = w_fc.shape[0]

    # ---- tile sizes ----------------------------------------------------------
    if N <= tile_n:
        n_pad = _round_up(N, 32)          # 32: int8 mask sublane packing
        td = ts = n_pad                   # single dst/src tile (full extent)
    else:
        td = ts = tile_n                  # multiples of 32 / 128: layout-legal
        n_pad = _round_up(N, tile_n)

    # graphs per grid step: amortize per-step overhead while keeping the f32
    # [Td, Ts] working set (~8 live temporaries per graph) inside a VMEM budget.
    per_graph = 8 * td * ts * 4
    bb = max(1, min(B, graphs_budget_bytes // per_graph, 64))
    b_pad = bb * pl.cdiv(B, bb)

    # ---- operand prep --------------------------------------------------------
    h_p = h.astype(jnp.bfloat16)                       # cheap O(B*N*din) stream
    if (b_pad, n_pad) != (B, N):
        h_p = jnp.pad(h_p, ((0, b_pad - B), (0, n_pad - N), (0, 0)))

    # TODO(synk): produce the int8 adjacency pre-padded upstream so this branch
    # never touches the O(B*N^2) mask again on the hot path.
    m_p = mask if mask.dtype == jnp.int8 else (mask != 0).astype(jnp.int8)
    if m_p.shape != (b_pad, n_pad, n_pad):
        m_p = jnp.pad(m_p, ((0, b_pad - B), (0, n_pad - N), (0, n_pad - N)))

    w_fc_t = w_fc.T.astype(jnp.bfloat16)                                 # [Din, Dout]
    w_attn2 = jnp.stack([w_attn[0, :dout], w_attn[0, dout:]],
                        axis=1).astype(jnp.bfloat16)                     # [Dout, 2]

    grid = (b_pad // bb, n_pad // td, n_pad // ts)

    # explicit scoped-VMEM budget (v5e default is 16 MiB, v6e/v7x 32 MiB;
    # v7x physical per-TC VMEM is 64 MiB -> cap well below it).
    est = (2 * bb * td * din * 2 + 2 * bb * ts * din * 2   # h dst/src double buffers
           + 2 * bb * td * ts * 1                          # int8 mask double buffer
           + 2 * bb * td * dout * 2                        # bf16 out double buffer
           + bb * td * (dout + 3) * 4                      # f32 scratch (acc, m, l, s_dst)
           + 8 * bb * td * ts * 4                          # f32 elementwise temporaries
           + 2 * (din * dout + 2 * dout) * 2)              # weights
    vmem_limit = int(min(48 * 1024 * 1024, max(32 * 1024 * 1024, 3 * est // 2)))

    out_p = pl.pallas_call(
        gnn_layer_kernel,
        out_shape=jax.ShapeDtypeStruct((b_pad, n_pad, dout), jnp.bfloat16),
        grid=grid,
        in_specs=[
            pl.BlockSpec((bb, td, din), lambda g, i, j: (g, i, 0)),   # h (dst rows)
            pl.BlockSpec((bb, ts, din), lambda g, i, j: (g, j, 0)),   # h (src rows)
            pl.BlockSpec((bb, td, ts), lambda g, i, j: (g, i, j)),    # adjacency tile
            pl.BlockSpec((din, dout), lambda g, i, j: (0, 0)),        # w_fc^T
            pl.BlockSpec((dout, 2), lambda g, i, j: (0, 0)),          # [a_src | a_dst]
        ],
        out_specs=pl.BlockSpec((bb, td, dout), lambda g, i, j: (g, i, 0)),
        scratch_shapes=[
            pltpu.VMEM((bb, td, 1), jnp.float32),      # cached z_dst @ a_dst
            pltpu.VMEM((bb, td, 1), jnp.float32),      # running max
            pltpu.VMEM((bb, td, 1), jnp.float32),      # running denominator
            pltpu.VMEM((bb, td, dout), jnp.float32),   # running weighted sum
        ],
        compiler_params=pltpu.CompilerParams(
            dimension_semantics=("parallel", "parallel", "arbitrary"),
            vmem_limit_bytes=vmem_limit,
        ),
    )(h_p, h_p, m_p, w_fc_t, w_attn2)
    # TODO(synk): for genuinely sparse graphs at large N, switch to a
    # PrefetchScalarGridSpec with per-(dst,src)-tile block indices so all-zero
    # mask tiles are skipped instead of streamed.
    return out_p[:B, :N, :]


def gnn_layer_reference(h, mask, w_fc, w_attn):
    """Pure-JAX f32 reference of the PyTorch GNNLayer forward."""
    dout = w_fc.shape[0]
    z = jnp.einsum("bnd,od->bno", h, w_fc)                       # [B, N, Dout]
    a_src = w_attn[0, :dout]
    a_dst = w_attn[0, dout:]
    s_src = jnp.einsum("bno,o->bn", z, a_src)                    # [B, N]
    s_dst = jnp.einsum("bno,o->bn", z, a_dst)                    # [B, N]
    e = s_dst[:, :, None] + s_src[:, None, :]                    # [B, dst, src]
    e = jnp.where(e > 0, e, 0.01 * e)
    e = jnp.where(mask > 0, e, -jnp.inf)
    alpha = jax.nn.softmax(e, axis=-1)
    alpha = jnp.where(mask > 0, alpha, 0.0)
    return jnp.einsum("bds,bso->bdo", alpha, z)


if __name__ == "__main__":
    B = 4           # batch of graphs
    N = 8           # nodes per graph
    IN_DIM = 16
    OUT_DIM = 16

    key = jax.random.PRNGKey(0)
    k_h, k_fc, k_attn = jax.random.split(key, 3)

    # input node features
    h = jax.random.normal(k_h, (B, N, IN_DIM), dtype=jnp.float32)

    # deterministic parameters (nn.Linear-style uniform init, bias=False)
    fc_bound = 1.0 / jnp.sqrt(IN_DIM)
    w_fc = jax.random.uniform(k_fc, (OUT_DIM, IN_DIM), jnp.float32,
                              -fc_bound, fc_bound)                 # [out, in]
    attn_bound = 1.0 / jnp.sqrt(2 * OUT_DIM)
    w_attn = jax.random.uniform(k_attn, (1, 2 * OUT_DIM), jnp.float32,
                                -attn_bound, attn_bound)           # [1, 2*out]

    # deterministic graph: self loops + two "next" neighbours; int8 (compact
    # dtype produced upstream, as the kernel wants), mask[dst, src].
    src_idx = jnp.arange(N)[None, :]
    dst_idx = jnp.arange(N)[:, None]
    adj = ((src_idx == dst_idx)
           | (((src_idx + 1) % N) == dst_idx)
           | (((src_idx + 2) % N) == dst_idx)).astype(jnp.int8)    # [N, N]
    mask = jnp.broadcast_to(adj, (B, N, N))

    out = gnn_layer_forward(h, mask, w_fc, w_attn)
    jax.block_until_ready(out)
    assert out.shape == (B, N, OUT_DIM)
    out_f32 = out.astype(jnp.float32)
    assert bool(jnp.all(jnp.isfinite(out_f32)))

    ref = gnn_layer_reference(h, mask, w_fc, w_attn)
    max_err = float(jnp.max(jnp.abs(out_f32 - ref)))
    assert max_err < 5e-2, f"kernel/reference mismatch: max abs err {max_err}"
    print("KERNEL_OK")
</pallas_src>

<mosaic_0001>
module attributes {stable_mosaic.version = 11 : i64} {
  func.func @gnn_layer_kernel(%arg0: i32, %arg1: i32, %arg2: i32, %arg3: memref<4x32x16xbf16, #tpu.memory_space<vmem>>, %arg4: memref<4x32x16xbf16, #tpu.memory_space<vmem>>, %arg5: memref<4x32x32xi8, #tpu.memory_space<vmem>>, %arg6: memref<16x16xbf16, #tpu.memory_space<vmem>>, %arg7: memref<16x2xbf16, #tpu.memory_space<vmem>>, %arg8: memref<4x32x16xbf16, #tpu.memory_space<vmem>>, %arg9: memref<4x32x1xf32, #tpu.memory_space<vmem>>, %arg10: memref<4x32x1xf32, #tpu.memory_space<vmem>>, %arg11: memref<4x32x1xf32, #tpu.memory_space<vmem>>, %arg12: memref<4x32x16xf32, #tpu.memory_space<vmem>>) attributes {dimension_semantics = [#tpu.dimension_semantics<parallel>, #tpu.dimension_semantics<parallel>, #tpu.dimension_semantics<arbitrary>], iteration_bounds = array<i64: 1, 1, 1>, scalar_prefetch = 0 : i64, scratch_operands = 4 : i64, tpu.core_type = #tpu.core_type<tc>, window_params = [{transform_indices = @transform_0, window_bounds = array<i64: 4, 32, 16>}, {transform_indices = @transform_1, window_bounds = array<i64: 4, 32, 16>}, {transform_indices = @transform_2, window_bounds = array<i64: 4, 32, 32>}, {pipeline_mode = #tpu.pipeline_mode<synchronous>, transform_indices = @transform_3, window_bounds = array<i64: 16, 16>}, {pipeline_mode = #tpu.pipeline_mode<synchronous>, transform_indices = @transform_4, window_bounds = array<i64: 16, 2>}, {transform_indices = @transform_5, window_bounds = array<i64: 4, 32, 16>}]} {
    %c0 = arith.constant 0 : index
    %c0_0 = arith.constant 0 : index
    %0 = vector.load %arg6[%c0, %c0_0] : memref<16x16xbf16, #tpu.memory_space<vmem>>, vector<16x16xbf16>
    %c0_1 = arith.constant 0 : index
    %c0_2 = arith.constant 0 : index
    %1 = vector.load %arg7[%c0_1, %c0_2] : memref<16x2xbf16, #tpu.memory_space<vmem>>, vector<16x2xbf16>
    %c0_i32 = arith.constant 0 : i32
    %2 = arith.cmpi eq, %arg2, %c0_i32 : i32
    %3 = arith.extui %2 : i1 to i32
    %c0_i32_3 = arith.constant 0 : i32
    %4 = arith.cmpi ne, %3, %c0_i32_3 : i32
    scf.if %4 {
      %c0_40 = arith.constant 0 : index
      %c0_41 = arith.constant 0 : index
      %c0_42 = arith.constant 0 : index
      %55 = vector.load %arg3[%c0_40, %c0_41, %c0_42] : memref<4x32x16xbf16, #tpu.memory_space<vmem>>, vector<4x32x16xbf16>
      %56 = vector.shape_cast %55 : vector<4x32x16xbf16> to vector<128x16xbf16>
      %cst_43 = arith.constant dense<0.000000e+00> : vector<128x16xf32>
      %57 = tpu.matmul %56, %0, %cst_43 {dimension_numbers = #tpu.dot_dimension_numbers<[1], [0], [0], [1], [0, 0, 1, 1], [], []>} : vector<128x16xbf16>, vector<16x16xbf16>, vector<128x16xf32> -> vector<128x16xf32>
      %58 = arith.truncf %57 : vector<128x16xf32> to vector<128x16xbf16>
      %cst_44 = arith.constant dense<0.000000e+00> : vector<128x2xf32>
      %59 = tpu.matmul %58, %1, %cst_44 {dimension_numbers = #tpu.dot_dimension_numbers<[1], [0], [0], [1], [0, 0, 1, 1], [], []>} : vector<128x16xbf16>, vector<16x2xbf16>, vector<128x2xf32> -> vector<128x2xf32>
      %60 = vector.extract_strided_slice %59 {offsets = [0, 1], sizes = [128, 1], strides = [1, 1]} : vector<128x2xf32> to vector<128x1xf32>
      %61 = vector.shape_cast %60 : vector<128x1xf32> to vector<4x32x1xf32>
      %c0_45 = arith.constant 0 : index
      %c0_46 = arith.constant 0 : index
      %c0_47 = arith.constant 0 : index
      %62 = vector.load %arg9[%c0_45, %c0_46, %c0_47] : memref<4x32x1xf32, #tpu.memory_space<vmem>>, vector<4x32x1xf32>
      tpu.vector_store %arg9[%c0_45, %c0_46, %c0_47], %61 {strides = array<i32>} : memref<4x32x1xf32, #tpu.memory_space<vmem>>, vector<4x32x1xf32>,
      %cst_48 = arith.constant -1.000000e+30 : f32
      %63 = vector.broadcast %cst_48 : f32 to vector<4x32x1xf32>
      %c0_49 = arith.constant 0 : index
      %c0_50 = arith.constant 0 : index
      %c0_51 = arith.constant 0 : index
      %64 = vector.load %arg10[%c0_49, %c0_50, %c0_51] : memref<4x32x1xf32, #tpu.memory_space<vmem>>, vector<4x32x1xf32>
      tpu.vector_store %arg10[%c0_49, %c0_50, %c0_51], %63 {strides = array<i32>} : memref<4x32x1xf32, #tpu.memory_space<vmem>>, vector<4x32x1xf32>,
      %cst_52 = arith.constant 0.000000e+00 : f32
      %65 = vector.broadcast %cst_52 : f32 to vector<4x32x1xf32>
      %c0_53 = arith.constant 0 : index
      %c0_54 = arith.constant 0 : index
      %c0_55 = arith.constant 0 : index
      %66 = vector.load %arg11[%c0_53, %c0_54, %c0_55] : memref<4x32x1xf32, #tpu.memory_space<vmem>>, vector<4x32x1xf32>
      tpu.vector_store %arg11[%c0_53, %c0_54, %c0_55], %65 {strides = array<i32>} : memref<4x32x1xf32, #tpu.memory_space<vmem>>, vector<4x32x1xf32>,
      %cst_56 = arith.constant 0.000000e+00 : f32
      %67 = vector.broadcast %cst_56 : f32 to vector<4x32x16xf32>
      %c0_57 = arith.constant 0 : index
      %c0_58 = arith.constant 0 : index
      %c0_59 = arith.constant 0 : index
      %68 = vector.load %arg12[%c0_57, %c0_58, %c0_59] : memref<4x32x16xf32, #tpu.memory_space<vmem>>, vector<4x32x16xf32>
      tpu.vector_store %arg12[%c0_57, %c0_58, %c0_59], %67 {strides = array<i32>} : memref<4x32x16xf32, #tpu.memory_space<vmem>>, vector<4x32x16xf32>,
    } else {
    }
    %c0_4 = arith.constant 0 : index
    %c0_5 = arith.constant 0 : index
    %c0_6 = arith.constant 0 : index
    %5 = vector.load %arg4[%c0_4, %c0_5, %c0_6] : memref<4x32x16xbf16, #tpu.memory_space<vmem>>, vector<4x32x16xbf16>
    %6 = vector.shape_cast %5 : vector<4x32x16xbf16> to vector<128x16xbf16>
    %cst = arith.constant dense<0.000000e+00> : vector<128x16xf32>
    %7 = tpu.matmul %6, %0, %cst {dimension_numbers = #tpu.dot_dimension_numbers<[1], [0], [0], [1], [0, 0, 1, 1], [], []>} : vector<128x16xbf16>, vector<16x16xbf16>, vector<128x16xf32> -> vector<128x16xf32>
    %8 = arith.truncf %7 : vector<128x16xf32> to vector<128x16xbf16>
    %cst_7 = arith.constant dense<0.000000e+00> : vector<128x2xf32>
    %9 = tpu.matmul %8, %1, %cst_7 {dimension_numbers = #tpu.dot_dimension_numbers<[1], [0], [0], [1], [0, 0, 1, 1], [], []>} : vector<128x16xbf16>, vector<16x2xbf16>, vector<128x2xf32> -> vector<128x2xf32>
    %10 = vector.extract_strided_slice %9 {offsets = [0, 0], sizes = [128, 1], strides = [1, 1]} : vector<128x2xf32> to vector<128x1xf32>
    %11 = vector.shape_cast %10 : vector<128x1xf32> to vector<4x32x1xf32>
    %12 = tpu.transpose %11, [0, 2, 1] : vector<4x32x1xf32> -> vector<4x1x32xf32>
    %c0_8 = arith.constant 0 : index
    %c0_9 = arith.constant 0 : index
    %c0_10 = arith.constant 0 : index
    %13 = vector.load %arg5[%c0_8, %c0_9, %c0_10] : memref<4x32x32xi8, #tpu.memory_space<vmem>>, vector<4x32x32xi8>
    %14 = arith.sitofp %13 : vector<4x32x32xi8> to vector<4x32x32xf32>
    %c0_11 = arith.constant 0 : index
    %c0_12 = arith.constant 0 : index
    %c0_13 = arith.constant 0 : index
    %15 = vector.load %arg9[%c0_11, %c0_12, %c0_13] : memref<4x32x1xf32, #tpu.memory_space<vmem>>, vector<4x32x1xf32>
    %16 = vector.broadcast %15 : vector<4x32x1xf32> to vector<4x32x32xf32>
    %17 = vector.broadcast %12 : vector<4x1x32xf32> to vector<4x32x32xf32>
    %18 = arith.addf %16, %17 : vector<4x32x32xf32>
    %cst_14 = arith.constant 0.00999999977 : f32
    %19 = vector.broadcast %cst_14 : f32 to vector<4x32x32xf32>
    %20 = arith.mulf %19, %18 : vector<4x32x32xf32>
    %21 = arith.maximumf %18, %20 : vector<4x32x32xf32>
    %cst_15 = arith.constant 1.000000e+00 : f32
    %22 = vector.broadcast %cst_15 : f32 to vector<4x32x32xf32>
    %23 = arith.subf %14, %22 : vector<4x32x32xf32>
    %cst_16 = arith.constant 1.000000e+30 : f32
    %24 = vector.broadcast %cst_16 : f32 to vector<4x32x32xf32>
    %25 = arith.mulf %23, %24 : vector<4x32x32xf32>
    %26 = arith.addf %21, %25 : vector<4x32x32xf32>
    %c0_17 = arith.constant 0 : index
    %c0_18 = arith.constant 0 : index
    %c0_19 = arith.constant 0 : index
    %27 = vector.load %arg10[%c0_17, %c0_18, %c0_19] : memref<4x32x1xf32, #tpu.memory_space<vmem>>, vector<4x32x1xf32>
    %cst_20 = arith.constant dense<0xFF800000> : vector<4x32xf32>
    %28 = vector.multi_reduction <maximumf>, %26, %cst_20 [2] : vector<4x32x32xf32> to vector<4x32xf32>
    %29 = vector.shape_cast %28 : vector<4x32xf32> to vector<4x32x1xf32>
    %30 = arith.maximumf %27, %29 : vector<4x32x1xf32>
    %31 = vector.broadcast %30 : vector<4x32x1xf32> to vector<4x32x32xf32>
    %32 = arith.subf %26, %31 : vector<4x32x32xf32>
    %33 = math.exp %32 : vector<4x32x32xf32>
    %34 = arith.mulf %33, %14 : vector<4x32x32xf32>
    %35 = arith.subf %27, %30 : vector<4x32x1xf32>
    %36 = math.exp %35 : vector<4x32x1xf32>
    %c0_21 = arith.constant 0 : index
    %c0_22 = arith.constant 0 : index
    %c0_23 = arith.constant 0 : index
    %37 = vector.load %arg11[%c0_21, %c0_22, %c0_23] : memref<4x32x1xf32, #tpu.memory_space<vmem>>, vector<4x32x1xf32>
    %38 = arith.mulf %36, %37 : vector<4x32x1xf32>
    %cst_24 = arith.constant dense<0.000000e+00> : vector<4x32xf32>
    %39 = vector.multi_reduction <add>, %34, %cst_24 [2] : vector<4x32x32xf32> to vector<4x32xf32>
    %40 = vector.shape_cast %39 : vector<4x32xf32> to vector<4x32x1xf32>
    %41 = arith.addf %38, %40 : vector<4x32x1xf32>
    %c0_25 = arith.constant 0 : index
    %c0_26 = arith.constant 0 : index
    %c0_27 = arith.constant 0 : index
    %42 = vector.load %arg11[%c0_25, %c0_26, %c0_27] : memref<4x32x1xf32, #tpu.memory_space<vmem>>, vector<4x32x1xf32>
    tpu.vector_store %arg11[%c0_25, %c0_26, %c0_27], %41 {strides = array<i32>} : memref<4x32x1xf32, #tpu.memory_space<vmem>>, vector<4x32x1xf32>,
    %c0_28 = arith.constant 0 : index
    %c0_29 = arith.constant 0 : index
    %c0_30 = arith.constant 0 : index
    %43 = vector.load %arg12[%c0_28, %c0_29, %c0_30] : memref<4x32x16xf32, #tpu.memory_space<vmem>>, vector<4x32x16xf32>
    %44 = vector.broadcast %36 : vector<4x32x1xf32> to vector<4x32x16xf32>
    %45 = arith.mulf %44, %43 : vector<4x32x16xf32>
    %46 = arith.truncf %34 : vector<4x32x32xf32> to vector<4x32x32xbf16>
    %47 = vector.shape_cast %8 : vector<128x16xbf16> to vector<4x32x16xbf16>
    "tpu.trace_start"() <{level = 10 : i32, message = "bds,bso->bdo"}> : () -> ()
    %cst_31 = arith.constant dense<0.000000e+00> : vector<4x32x16xf32>
    %48 = tpu.matmul %46, %47, %cst_31 {dimension_numbers = #tpu.dot_dimension_numbers<[2], [1], [1], [2], [0, 0, 0, 1, 1, 2], [0], [0]>} : vector<4x32x32xbf16>, vector<4x32x16xbf16>, vector<4x32x16xf32> -> vector<4x32x16xf32>
    "tpu.trace_stop"() : () -> ()
    %49 = arith.addf %45, %48 : vector<4x32x16xf32>
    %c0_32 = arith.constant 0 : index
    %c0_33 = arith.constant 0 : index
    %c0_34 = arith.constant 0 : index
    %50 = vector.load %arg12[%c0_32, %c0_33, %c0_34] : memref<4x32x16xf32, #tpu.memory_space<vmem>>, vector<4x32x16xf32>
    tpu.vector_store %arg12[%c0_32, %c0_33, %c0_34], %49 {strides = array<i32>} : memref<4x32x16xf32, #tpu.memory_space<vmem>>, vector<4x32x16xf32>,
    %c0_35 = arith.constant 0 : index
    %c0_36 = arith.constant 0 : index
    %c0_37 = arith.constant 0 : index
    %51 = vector.load %arg10[%c0_35, %c0_36, %c0_37] : memref<4x32x1xf32, #tpu.memory_space<vmem>>, vector<4x32x1xf32>
    tpu.vector_store %arg10[%c0_35, %c0_36, %c0_37], %30 {strides = array<i32>} : memref<4x32x1xf32, #tpu.memory_space<vmem>>, vector<4x32x1xf32>,
    %c0_i32_38 = arith.constant 0 : i32
    %52 = arith.cmpi eq, %arg2, %c0_i32_38 : i32
    %53 = arith.extui %52 : i1 to i32
    %c0_i32_39 = arith.constant 0 : i32
    %54 = arith.cmpi ne, %53, %c0_i32_39 : i32
    scf.if %54 {
      %c0_40 = arith.constant 0 : index
      %c0_41 = arith.constant 0 : index
      %c0_42 = arith.constant 0 : index
      %55 = vector.load %arg11[%c0_40, %c0_41, %c0_42] : memref<4x32x1xf32, #tpu.memory_space<vmem>>, vector<4x32x1xf32>
      %cst_43 = arith.constant 0.000000e+00 : f32
      %56 = vector.broadcast %cst_43 : f32 to vector<4x32x1xf32>
      %57 = arith.cmpf ogt, %55, %56 : vector<4x32x1xf32>
      %cst_44 = arith.constant 1.000000e+00 : f32
      %58 = vector.broadcast %cst_44 : f32 to vector<4x32x1xf32>
      %59 = arith.select %57, %55, %58 : vector<4x32x1xi1>, vector<4x32x1xf32>
      %60 = tpu.reciprocal %59 {approx = true} : vector<4x32x1xf32> -> vector<4x32x1xf32>
      %c0_45 = arith.constant 0 : index
      %c0_46 = arith.constant 0 : index
      %c0_47 = arith.constant 0 : index
      %61 = vector.load %arg12[%c0_45, %c0_46, %c0_47] : memref<4x32x16xf32, #tpu.memory_space<vmem>>, vector<4x32x16xf32>
      %62 = vector.broadcast %60 : vector<4x32x1xf32> to vector<4x32x16xf32>
      %63 = arith.mulf %61, %62 : vector<4x32x16xf32>
      %64 = arith.truncf %63 : vector<4x32x16xf32> to vector<4x32x16xbf16>
      %c0_48 = arith.constant 0 : index
      %c0_49 = arith.constant 0 : index
      %c0_50 = arith.constant 0 : index
      %65 = vector.load %arg8[%c0_48, %c0_49, %c0_50] : memref<4x32x16xbf16, #tpu.memory_space<vmem>>, vector<4x32x16xbf16>
      tpu.vector_store %arg8[%c0_48, %c0_49, %c0_50], %64 {strides = array<i32>} : memref<4x32x16xbf16, #tpu.memory_space<vmem>>, vector<4x32x16xbf16>,
    } else {
    }
    return
  }
  func.func @transform_0(%arg0: i32, %arg1: i32, %arg2: i32) -> (i32, i32, i32) {
    %c0_i32 = arith.constant 0 : i32
    %c0_i32_0 = arith.constant 0 : i32
    return %arg0, %arg1, %c0_i32 : i32, i32, i32
  }
  func.func @transform_1(%arg0: i32, %arg1: i32, %arg2: i32) -> (i32, i32, i32) {
    %c0_i32 = arith.constant 0 : i32
    %c0_i32_0 = arith.constant 0 : i32
    return %arg0, %arg2, %c0_i32 : i32, i32, i32
  }
  func.func @transform_2(%arg0: i32, %arg1: i32, %arg2: i32) -> (i32, i32, i32) {
    %c0_i32 = arith.constant 0 : i32
    return %arg0, %arg1, %arg2 : i32, i32, i32
  }
  func.func @transform_3(%arg0: i32, %arg1: i32, %arg2: i32) -> (i32, i32) {
    %c0_i32 = arith.constant 0 : i32
    %c0_i32_0 = arith.constant 0 : i32
    %c0_i32_1 = arith.constant 0 : i32
    return %c0_i32, %c0_i32_0 : i32, i32
  }
  func.func @transform_4(%arg0: i32, %arg1: i32, %arg2: i32) -> (i32, i32) {
    %c0_i32 = arith.constant 0 : i32
    %c0_i32_0 = arith.constant 0 : i32
    %c0_i32_1 = arith.constant 0 : i32
    return %c0_i32, %c0_i32_0 : i32, i32
  }
  func.func @transform_5(%arg0: i32, %arg1: i32, %arg2: i32) -> (i32, i32, i32) {
    %c0_i32 = arith.constant 0 : i32
    %c0_i32_0 = arith.constant 0 : i32
    return %arg0, %arg1, %c0_i32 : i32, i32, i32
  }
}

</mosaic_0001>

<bundles_post_ra>
// kernel: tpu_custom_call.1
= control target key start
LH: loop header
LB: loop body
LE: loop exit
PB: predicated region body
PF: predicated region fallthrough
CT: control target
= control target key end

     0   :  { %vm91_vm0 = vcmask 130048   ;;  %vm316_vm1 = vcmask 7168   ;;  %vm1028_vm2 = vcmask 261120   ;;  %s2998_s3 = inlined_call_operand.vmem [shape: bf16[16,16], index: 3, kind: input, shape index: {}]   ;;  %s2999_s0 = inlined_call_operand.vmem [shape: bf16[4,32,16], index: 0, kind: input, shape index: {}]   ;;  %s3000_s1 = inlined_call_operand.vmem [shape: bf16[4,32,16], index: 1, kind: input, shape index: {}]   ;;  %s3001_s4 = inlined_call_operand.vmem [shape: bf16[16,2], index: 4, kind: input, shape index: {}]   ;;  %s3002_s2 = inlined_call_operand.vmem [shape: s8[4,32,32], index: 2, kind: input, shape index: {}]   ;;  %s3003_s5 = inlined_call_operand.vmem [shape: bf16[4,32,16], index: 5, kind: output, shape index: {}]  }
   0x1   :  { %v2075_v0 = vld [vmem:[%s2998_s3] sm:$0xff]  ;;  %v2079_v4 = vld [vmem:[%s2999_s0 + $0x8] sm:$0xff]  ;;  %v2080_v6 = vld [vmem:[%s2999_s0 + $0x10] sm:$0xff] }
   0x2   :  { %v2078_v1 = vld [vmem:[%s2999_s0] sm:$0xff]  ;;  %123 = vmatpush.bf16.msra.mxu0 %v2075_v0  ;;  %v2087_v5 = vld [vmem:[%s3000_s1 + $0x8] sm:$0xff]  ;;  %v2088_v7 = vld [vmem:[%s3000_s1 + $0x10] sm:$0xff] }
   0x3   :  { %v2074_v2 = vld [vmem:[%s2998_s3] sm:$0xff]  ;;  %v2081_v8 = vld [vmem:[%s2999_s0 + $0x18] sm:$0xff]  ;;  %v2083_v12 = vld [vmem:[%s2999_s0 + $0x28] sm:$0xff] }
   0x4   :  { %v2086_v3 = vld [vmem:[%s3000_s1] sm:$0xff]  ;;  %475 = vmatpush.bf16.msra.mxu2 %v2074_v2  ;;  %v2089_v9 = vld [vmem:[%s3000_s1 + $0x18] sm:$0xff]  ;;  %v2084_v13 = vld [vmem:[%s2999_s0 + $0x30] sm:$0xff] }
   0x5   :  { %1974 = vmatmul.msk.bf16.vlgmr.msra.gmra.mxu0 %vm91_vm0, %v2078_v1  ;;  %v2082_v10 = vld [vmem:[%s2999_s0 + $0x20] sm:$0xff]  ;;  %v2091_v14 = vld [vmem:[%s3000_s1 + $0x28] sm:$0xff]  ;;  %v2085_v56 = vld [vmem:[%s2999_s0 + $0x38] sm:$0xff] }
   0x6   :  { %v2090_v11 = vld [vmem:[%s3000_s1 + $0x20] sm:$0xff]  ;;  %v2092_v61 = vld [vmem:[%s3000_s1 + $0x30] sm:$0xff] }
   0x7   :  { %2030 = vmatmul.msk.bf16.vlgmr.msra.gmra.mxu2 %vm91_vm0, %v2086_v3  ;;  %v2077_v15 = vld [vmem:[%s3001_s4] sm:$0xff] }
   0x8   :  { %210 = vmatpush.bf16.msra.mxu1 %v2077_v15  ;;  %v2076_v26 = vld [vmem:[%s3001_s4] sm:$0xff] }
   0x9   :  { %610 = vmatpush.bf16.msra.mxu3 %v2076_v26 }
  0x15   :  { %1975 = vmatmul.msk.bf16.gmra.mxu0 %vm91_vm0, %v2079_v4 }
  0x17   :  { %2031 = vmatmul.msk.bf16.gmra.mxu2 %vm91_vm0, %v2087_v5 }
  0x25   :  { %1976 = vmatmul.msk.bf16.gmra.mxu0 %vm91_vm0, %v2080_v6  ;;  %v2093_v6 = vld [vmem:[%s3000_s1 + $0x38] sm:$0xff]  ;;  %s2197_s1 = smov 127  }
  0x27   :  { %2032 = vmatmul.msk.bf16.gmra.mxu2 %vm91_vm0, %v2088_v7 }
  0x35   :  { %1977 = vmatmul.msk.bf16.gmra.mxu0 %vm91_vm0, %v2081_v8 }
  0x37   :  { %2033 = vmatmul.msk.bf16.gmra.mxu2 %vm91_vm0, %v2089_v9 }
  0x45   :  { %1978 = vmatmul.msk.bf16.gmra.mxu0 %vm91_vm0, %v2082_v10 }
  0x47   :  { %2034 = vmatmul.msk.bf16.gmra.mxu2 %vm91_vm0, %v2090_v11 }
  0x55   :  { %1979 = vmatmul.msk.bf16.gmra.mxu0 %vm91_vm0, %v2083_v12 }
  0x57   :  { %2035 = vmatmul.msk.bf16.gmra.mxu2 %vm91_vm0, %v2091_v14 }
  0x65   :  { %1980 = vmatmul.msk.bf16.gmra.mxu0 %vm91_vm0, %v2084_v13 }
  0x67   :  { %2036 = vmatmul.msk.bf16.gmra.mxu2 %vm91_vm0, %v2092_v61 }
  0x75   :  { %1981 = vmatmul.msk.bf16.gmra.mxu0 %vm91_vm0, %v2085_v56 }
  0x77   :  { %2037 = vmatmul.msk.bf16.gmra.mxu2 %vm91_vm0, %v2093_v6 }
  0x82   :  { %v125_v16 = vpop.f32.mrf.mxu0 }
  0x8a   :  { %v477_v17 = vpop.f32.mrf.mxu2  ;;  %v127_v18 = vpop.f32.mrf.mxu0 }
  0x8b   :  { %v165_v19 = vpack.c.bf16 %v127_v18, %v125_v16  ;;  %v517_v20 = vpack.c.bf16 %v477_v17, %v477_v17 }
  0x8d   :  { %1986 = vmatmul.msk.bf16.vlgmr.msra.gmra.mxu1 %vm91_vm0, %v165_v19  ;;  %v549_v24 = vunpack.c.l.b16 %v517_v20 }
  0x92   :  { %v479_v21 = vpop.f32.mrf.mxu2  ;;  %v130_v22 = vpop.f32.mrf.mxu0 }
  0x93   :  { %v518_v23 = vpack.c.bf16 %v479_v21, %v479_v21 }
  0x95   :  { %v550_v25 = vunpack.c.l.b16 %v518_v23 }
  0x97   :  { %v565_v27 = vpack.c.b16 %v550_v25, %v549_v24 }
  0x99   :  { %2042 = vmatmul.msk.bf16.vlgmr.msra.gmra.mxu3 %vm91_vm0, %v565_v27 }
  0x9a   :  { %v482_v28 = vpop.f32.mrf.mxu2  ;;  %v132_v29 = vpop.f32.mrf.mxu0 }
  0x9b   :  { %v166_v30 = vpack.c.bf16 %v132_v29, %v130_v22  ;;  %v519_v31 = vpack.c.bf16 %v482_v28, %v482_v28 }
  0x9d   :  { %1987 = vmatmul.msk.bf16.gmra.mxu1 %vm91_vm0, %v166_v30  ;;  %v551_v34 = vunpack.c.l.b16 %v519_v31 }
  0xa2   :  { %v484_v32 = vpop.f32.mrf.mxu2  ;;  %v135_v33 = vpop.f32.mrf.mxu0 }
  0xa3   :  { %v520_v35 = vpack.c.bf16 %v484_v32, %v484_v32 }
  0xa5   :  { %v552_v36 = vunpack.c.l.b16 %v520_v35 }
  0xa7   :  { %v566_v37 = vpack.c.b16 %v552_v36, %v551_v34 }
  0xa9   :  { %1550 = vmatpush.bf16.msrb.mxu0 %v566_v37  ;;  %2043 = vmatmul.msk.bf16.gmra.mxu3 %vm91_vm0, %v566_v37 }
  0xaa   :  { %v487_v38 = vpop.f32.mrf.mxu2  ;;  %v137_v39 = vpop.f32.mrf.mxu0 }
  0xab   :  { %v167_v40 = vpack.c.bf16 %v137_v39, %v135_v33  ;;  %v521_v41 = vpack.c.bf16 %v487_v38, %v487_v38 }
  0xad   :  { %1551 = vmatpush.bf16.msrb.mxu0 %v565_v27  ;;  %1988 = vmatmul.msk.bf16.gmra.mxu1 %vm91_vm0, %v167_v40  ;;  %v553_v45 = vunpack.c.l.b16 %v521_v41 }
  0xb2   :  { %v489_v42 = vpop.f32.mrf.mxu2  ;;  %v140_v43 = vpop.f32.mrf.mxu0 }
  0xb3   :  { %v522_v44 = vpack.c.bf16 %v489_v42, %v489_v42 }
  0xb5   :  { %v554_v46 = vunpack.c.l.b16 %v522_v44 }
  0xb7   :  { %v567_v47 = vpack.c.b16 %v554_v46, %v553_v45 }
  0xb9   :  { %2044 = vmatmul.msk.bf16.gmra.mxu3 %vm91_vm0, %v567_v47 }
  0xba   :  { %v492_v48 = vpop.f32.mrf.mxu2  ;;  %v142_v49 = vpop.f32.mrf.mxu0 }
  0xbb   :  { %v168_v50 = vpack.c.bf16 %v142_v49, %v140_v43  ;;  %v523_v51 = vpack.c.bf16 %v492_v48, %v492_v48 }
  0xbd   :  { %1989 = vmatmul.msk.bf16.gmra.mxu1 %vm91_vm0, %v168_v50  ;;  %v555_v54 = vunpack.c.l.b16 %v523_v51 }
  0xc2   :  { %v494_v52 = vpop.f32.mrf.mxu2  ;;  %v145_v53 = vpop.f32.mrf.mxu0 }
  0xc3   :  { %v524_v55 = vpack.c.bf16 %v494_v52, %v494_v52 }
  0xc5   :  { %v556_v57 = vunpack.c.l.b16 %v524_v55 }
  0xc7   :  { %v568_v58 = vpack.c.b16 %v556_v57, %v555_v54 }
  0xc9   :  { %1587 = vmatpush.bf16.msrb.mxu1 %v568_v58  ;;  %2045 = vmatmul.msk.bf16.gmra.mxu3 %vm91_vm0, %v568_v58 }
  0xca   :  { %v147_v59 = vpop.f32.mrf.mxu0  ;;  %v497_v62 = vpop.f32.mrf.mxu2 }
  0xcb   :  { %v169_v60 = vpack.c.bf16 %v147_v59, %v145_v53  ;;  %v525_v0 = vpack.c.bf16 %v497_v62, %v497_v62 }
  0xcd   :  { %1588 = vmatpush.bf16.msrb.mxu1 %v567_v47  ;;  %v557_v2 = vunpack.c.l.b16 %v525_v0 }
  0xce   :  { %1990 = vmatmul.msk.bf16.gmra.mxu1 %vm91_vm0, %v169_v60 }
  0xd2   :  { %v150_v63 = vpop.f32.mrf.mxu0  ;;  %v499_v1 = vpop.f32.mrf.mxu2 }
  0xd3   :  { %v526_v3 = vpack.c.bf16 %v499_v1, %v499_v1 }
  0xd5   :  { %v558_v4 = vunpack.c.l.b16 %v526_v3 }
  0xd7   :  { %v569_v7 = vpack.c.b16 %v558_v4, %v557_v2 }
  0xd9   :  { %2046 = vmatmul.msk.bf16.gmra.mxu3 %vm91_vm0, %v569_v7 }
  0xda   :  { %v152_v5 = vpop.f32.mrf.mxu0  ;;  %v502_v11 = vpop.f32.mrf.mxu2 }
  0xdb   :  { %v170_v8 = vpack.c.bf16 %v152_v5, %v150_v63  ;;  %v527_v13 = vpack.c.bf16 %v502_v11, %v502_v11  ;;  %v2198_v5 = vmov 0  }
  0xdd   :  { %v559_v15 = vunpack.c.l.b16 %v527_v13 }
  0xde   :  { %1991 = vmatmul.msk.bf16.gmra.mxu1 %vm91_vm0, %v170_v8 }
  0xe2   :  { %v155_v9 = vpop.f32.mrf.mxu0  ;;  %v504_v14 = vpop.f32.mrf.mxu2 }
  0xe3   :  { %v528_v16 = vpack.c.bf16 %v504_v14, %v504_v14 }
  0xe5   :  { %v560_v17 = vunpack.c.l.b16 %v528_v16 }
  0xe7   :  { %v570_v18 = vpack.c.b16 %v560_v17, %v559_v15 }
  0xe9   :  { %2047 = vmatmul.msk.bf16.gmra.mxu3 %vm91_vm0, %v570_v18  ;;  %1624 = vmatpush.bf16.msrb.mxu2 %v570_v18 }
  0xea   :  { %v157_v10 = vpop.f32.mrf.mxu0  ;;  %v507_v34 = vpop.f32.mrf.mxu2 }
  0xeb   :  { %v171_v12 = vpack.c.bf16 %v157_v10, %v155_v9  ;;  %v529_v37 = vpack.c.bf16 %v507_v34, %v507_v34 }
  0xed   :  { %1625 = vmatpush.bf16.msrb.mxu2 %v569_v7  ;;  %v561_v40 = vunpack.c.l.b16 %v529_v37  ;;  %v2366_v37 = vld [vmem:[%s3002_s2] sm:$0xff] }
  0xee   :  { %1992 = vmatmul.msk.bf16.gmra.mxu1 %vm91_vm0, %v171_v12 }
  0xf2   :  { %v160_v28 = vpop.f32.mrf.mxu0  ;;  %v509_v38 = vpop.f32.mrf.mxu2 }
  0xf3   :  { %v530_v41 = vpack.c.bf16 %v509_v38, %v509_v38  ;;  %v784_v38 = vunpack.c.0.s8 %v2366_v37 }
  0xf5   :  { %v562_v42 = vunpack.c.l.b16 %v530_v41  ;;  %v2375_v41 = vcvt.s32.f32 %v784_v38 }
  0xf7   :  { %v571_v44 = vpack.c.b16 %v562_v42, %v561_v40  ;;  %v2373_v40 = vld [vmem:[%s3002_s2 + $0x8] sm:$0xff] }
  0xf9   :  { %2048 = vmatmul.msk.bf16.gmra.mxu3 %vm91_vm0, %v571_v44 }
  0xfa   :  { %v162_v30 = vpop.f32.mrf.mxu0  ;;  %v512_v45 = vpop.f32.mrf.mxu2 }
  0xfb   :  { %v172_v33 = vpack.c.bf16 %v162_v30, %v160_v28  ;;  %v531_v47 = vpack.c.bf16 %v512_v45, %v512_v45 }
  0xfd   :  { %v563_v52 = vunpack.c.l.b16 %v531_v47 }
  0xfe   :  { %1993 = vmatmul.msk.bf16.gmra.mxu1 %vm91_vm0, %v172_v33 }
 0x102   :  { %v514_v49 = vpop.f32.mrf.mxu2 }
 0x103   :  { %v532_v51 = vpack.c.bf16 %v514_v49, %v514_v49 }
 0x105   :  { %v564_v53 = vunpack.c.l.b16 %v532_v51 }
 0x107   :  { %v572_v54 = vpack.c.b16 %v564_v53, %v563_v52 }
 0x109   :  { %1661 = vmatpush.bf16.msrb.mxu3 %v572_v54 }
 0x10a   :  { %v212_v19 = vpop.f32.mrf.mxu1  ;;  %2049 = vmatmul.msk.bf16.gmra.mxu3 %vm91_vm0, %v572_v54 }
 0x10b   :  { %268 = vrot.lane.b32.xlu0 %v212_v19, %s2197_s1 }
 0x10d   :  { %1662 = vmatpush.bf16.msrb.mxu3 %v571_v44 }
 0x112   :  { %v214_v20 = vpop.f32.mrf.mxu1 }
 0x113   :  { %270 = vrot.lane.b32.xlu0 %v214_v20, %s2197_s1 }
 0x11a   :  { %v217_v21 = vpop.f32.mrf.mxu1 }
 0x11b   :  { %272 = vrot.lane.b32.xlu1 %v217_v21, %s2197_s1 }
 0x11c   :  { %v612_v25 = vpop.f32.mrf.mxu3 }
 0x122   :  { %v219_v22 = vpop.f32.mrf.mxu1 }
 0x123   :  { %274 = vrot.lane.b32.xlu1 %v219_v22, %s2197_s1 }
 0x124   :  { %v614_v27 = vpop.f32.mrf.mxu3 }
 0x12a   :  { %v222_v23 = vpop.f32.mrf.mxu1 }
 0x12b   :  { %276 = vrot.lane.b32.xlu2 %v222_v23, %s2197_s1 }
 0x12c   :  { %v617_v32 = vpop.f32.mrf.mxu3 }
 0x132   :  { %v224_v24 = vpop.f32.mrf.mxu1 }
 0x133   :  { %278 = vrot.lane.b32.xlu2 %v224_v24, %s2197_s1 }
 0x134   :  { %v619_v36 = vpop.f32.mrf.mxu3 }
 0x13a   :  { %v227_v26 = vpop.f32.mrf.mxu1 }
 0x13b   :  { %280 = vrot.lane.b32.xlu0 %v227_v26, %s2197_s1 }
 0x13c   :  { %v622_v43 = vpop.f32.mrf.mxu3 }
 0x142   :  { %v2327_v29 = vpop.f32.mrf.mxu1 }
 0x144   :  { %v624_v48 = vpop.f32.mrf.mxu3 }
 0x14b   :  { %v232_v31 = vpop.f32.mrf.mxu1 }
 0x14c   :  { %284 = vrot.lane.b32.xlu2 %v232_v31, %s2197_s1  ;;  %v627_v55 = vpop.f32.mrf.mxu3 }
 0x153   :  { %v234_v35 = vpop.f32.mrf.mxu1 }
 0x154   :  { %286 = vrot.lane.b32.xlu0 %v234_v35, %s2197_s1  ;;  %v629_v56 = vpop.f32.mrf.mxu3 }
 0x158   :  { %652 = vxpose.xlu1.b32.start [1/4] (short) (narrow) %v612_v25, 8 }
 0x15b   :  { %v237_v39 = vpop.f32.mrf.mxu1 }
 0x15c   :  { %v632_v58 = vpop.f32.mrf.mxu3 }
 0x160   :  { %653 = vxpose.xlu1.b32.cont [2/4] (short) (narrow) %v614_v27, 8 }
 0x163   :  { %v239_v46 = vpop.f32.mrf.mxu1 }
 0x164   :  { %v634_v63 = vpop.f32.mrf.mxu3 }
 0x168   :  { %654 = vxpose.xlu1.b32.cont [3/4] (short) (narrow) %v617_v32, 8 }
 0x16b   :  { %v242_v50 = vpop.f32.mrf.mxu1 }
 0x16c   :  { %292 = vrot.lane.b32.xlu0 %v242_v50, %s2197_s1  ;;  %v637_v1 = vpop.f32.mrf.mxu3 }
 0x170   :  { %655 = vxpose.xlu1.b32.end [4/4] (short) (narrow) %v619_v36, 8 }
 0x172   :  { %684 = vxpose.xlu2.b32.start [1/4] (short) (narrow) %v622_v43, 8  ;;  %v788_v43 = vunpack.c.0.s8 %v2373_v40 }
 0x173   :  { %v244_v7 = vpop.f32.mrf.mxu1 }
 0x174   :  { %v639_v2 = vpop.f32.mrf.mxu3  ;;  %v2385_v51 = vcvt.s32.f32 %v788_v43 }
 0x17a   :  { %685 = vxpose.xlu2.b32.cont [2/4] (short) (narrow) %v624_v48, 8 }
 0x17b   :  { %v247_v12 = vpop.f32.mrf.mxu1 }
 0x17c   :  { %v642_v16 = vpop.f32.mrf.mxu3 }
 0x17d   :  { %v269_v57 = vpop.permute.xlu0 %268 }
 0x17e   :  { %317 = vst.msk [vmem:[#allocation2] sm:$0xff] %vm316_vm1, %v269_v57 }
 0x182   :  { %686 = vxpose.xlu2.b32.cont [3/4] (short) (narrow) %v627_v55, 8 }
 0x183   :  { %v249_v15 = vpop.f32.mrf.mxu1 }
 0x184   :  { %v644_v19 = vpop.f32.mrf.mxu3 }
 0x185   :  { %v271_v59 = vpop.permute.xlu0 %270  ;;  %v277_v60 = vpop.permute.xlu2 %276  ;;  %v816_v17 = vld [vmem:[#allocation2] sm:$0xff] }
 0x186   :  { %318 = vst.msk [vmem:[#allocation2 + $0x8] sm:$0xff] %vm316_vm1, %v271_v59 }
 0x187   :  { %321 = vst.msk [vmem:[#allocation2 + $0x20] sm:$0xff] %vm316_vm1, %v277_v60 }
 0x18a   :  { %687 = vxpose.xlu2.b32.end [4/4] (short) (narrow) %v629_v56, 8  ;;  %v2054_v56 = vadd.f32 -1.0, %v2385_v51 }
 0x18c   :  { %v984_v60 = vmul.f32 1e+30, %v2054_v56 }
 0x18d   :  { %v273_v61 = vpop.permute.xlu1 %272  ;;  %v279_v62 = vpop.permute.xlu2 %278  ;;  %v817_v8 = vld [vmem:[#allocation2 + $0x8] sm:$0xff] }
 0x18e   :  { %716 = vxpose.xlu0.b32.start [1/4] (short) (narrow) %v632_v58, 8  ;;  %319 = vst.msk [vmem:[#allocation2 + $0x10] sm:$0xff] %vm316_vm1, %v273_v61  ;;  %v820_v11 = vld [vmem:[#allocation2 + $0x20] sm:$0xff]  ;;  %v647_v20 = vpop.f32.mrf.mxu3 }
 0x18f   :  { %322 = vst.msk [vmem:[#allocation2 + $0x28] sm:$0xff] %vm316_vm1, %v279_v62 }
 0x195   :  { %v275_v0 = vpop.permute.xlu1 %274 }
 0x196   :  { %717 = vxpose.xlu0.b32.cont [2/4] (short) (narrow) %v634_v63, 8  ;;  %320 = vst.msk [vmem:[#allocation2 + $0x18] sm:$0xff] %vm316_vm1, %v275_v0  ;;  %v821_v18 = vld [vmem:[#allocation2 + $0x28] sm:$0xff]  ;;  %v649_v22 = vpop.f32.mrf.mxu3  ;;  %v818_v63 = vld [vmem:[#allocation2 + $0x10] sm:$0xff] }
 0x19d   :  { %v819_v10 = vld [vmem:[#allocation2 + $0x18] sm:$0xff] }
 0x19e   :  { %718 = vxpose.xlu0.b32.cont [3/4] (short) (narrow) %v637_v1, 8 }
 0x1a6   :  { %v285_v3 = vpop.permute.xlu2 %284  ;;  %719 = vxpose.xlu0.b32.end [4/4] (short) (narrow) %v639_v2, 8  ;;  %v791_v2 = vunpack.c.3.s8 %v2373_v40 }
 0x1a7   :  { %325 = vst.msk [vmem:[#allocation2 + $0x40] sm:$0xff] %vm316_vm1, %v285_v3 }
 0x1ad   :  { %v281_v4 = vpop.permute.xlu0 %280 }
 0x1ae   :  { %323 = vst.msk [vmem:[#allocation2 + $0x30] sm:$0xff] %vm316_vm1, %v281_v4  ;;  %v824_v14 = vld [vmem:[#allocation2 + $0x40] sm:$0xff] }
 0x1b5   :  { %v822_v13 = vld [vmem:[#allocation2 + $0x30] sm:$0xff] }
 0x1c3   :  { %2099 = vset.pattern.permute.xlu1 %v2198_v5 }
 0x1c6   :  { %v287_v6 = vpop.permute.xlu0 %286 }
 0x1c7   :  { %326 = vst.msk [vmem:[#allocation2 + $0x48] sm:$0xff] %vm316_vm1, %v287_v6  ;;  %v2400_v6 = vcvt.s32.f32 %v791_v2 }
 0x1ca   :  { %282 = vrot.lane.b32.xlu1 %v2327_v29, %s2197_s1 }
 0x1ce   :  { %v825_v30 = vld [vmem:[#allocation2 + $0x48] sm:$0xff] }
 0x1d2   :  { %288 = vrot.lane.b32.xlu1 %v237_v39, %s2197_s1 }
 0x1da   :  { %294 = vrot.lane.b32.xlu1 %v244_v7, %s2197_s1  ;;  %v2057_v7 = vadd.f32 -1.0, %v2400_v6 }
 0x1de   :  { %v293_v9 = vpop.permute.xlu0 %292 }
 0x1df   :  { %329 = vst.msk [vmem:[#allocation2 + $0x60] sm:$0xff] %vm316_vm1, %v293_v9 }
 0x1e2   :  { %839 = vperm.xlu1 %2099, %v817_v8  }
 0x1e6   :  { %v828_v32 = vld [vmem:[#allocation2 + $0x60] sm:$0xff] }
 0x1ea   :  { %849 = vperm.xlu1 %2099, %v819_v10  }
 0x1f2   :  { %854 = vperm.xlu1 %2099, %v820_v11  }
 0x1f3   :  { %290 = vrot.lane.b32.xlu2 %v239_v46, %s2197_s1  ;;  %v2050_v46 = vadd.f32 -1.0, %v2375_v41 }
 0x1f5   :  { %v980_v53 = vmul.f32 1e+30, %v2050_v46 }
 0x1fa   :  { %864 = vperm.xlu1 %2099, %v822_v13   ;;  %v987_v13 = vmul.f32 1e+30, %v2057_v7 }
 0x1fb   :  { %296 = vrot.lane.b32.xlu2 %v247_v12, %s2197_s1 }
 0x1fc   :  { %v668_v21 = vpop.trf.xlu1 }
 0x1fd   :  { %v2380_v45 = vperm.slane %v668_v21, 0 }
 0x202   :  { %874 = vperm.xlu1 %2099, %v824_v14  }
 0x20b   :  { %v700_v24 = vpop.trf.xlu2 }
 0x20c   :  { %v2377_v42 = vperm.slane %v700_v24, 0 }
 0x20d   :  { %2098 = vset.pattern.permute.xlu0 %v2198_v5 }
 0x214   :  { %298 = vrot.lane.b32.xlu0 %v249_v15, %s2197_s1 }
 0x21c   :  { %834 = vperm.xlu0 %2098, %v816_v17  }
 0x221   :  { %748 = vxpose.xlu2.b32.start [1/4] (short) (narrow) %v642_v16, 8  ;;  %v2417_v16 = vld [vmem:[%s3002_s2 + $0x18] sm:$0xff] }
 0x222   :  { %v797_v21 = vunpack.c.1.s8 %v2417_v16 }
 0x224   :  { %859 = vperm.xlu0 %2098, %v821_v18  }
 0x229   :  { %749 = vxpose.xlu2.b32.cont [2/4] (short) (narrow) %v644_v19, 8 }
 0x231   :  { %750 = vxpose.xlu2.b32.cont [3/4] (short) (narrow) %v647_v20, 8 }
 0x232   :  { %v732_v35 = vpop.trf.xlu0 }
 0x233   :  { %v2419_v17 = vperm.slane %v732_v35, 0 }
 0x239   :  { %751 = vxpose.xlu2.b32.end [4/4] (short) (narrow) %v649_v22, 8 }
 0x23c   :  { %v283_v23 = vpop.permute.xlu1 %282 }
 0x23d   :  { %324 = vst.msk [vmem:[#allocation2 + $0x38] sm:$0xff] %vm316_vm1, %v283_v23 }
 0x244   :  { %v289_v25 = vpop.permute.xlu1 %288  ;;  %v823_v26 = vld [vmem:[#allocation2 + $0x38] sm:$0xff] }
 0x245   :  { %327 = vst.msk [vmem:[#allocation2 + $0x50] sm:$0xff] %vm316_vm1, %v289_v25  ;;  %869 = vperm.xlu0 %2098, %v823_v26  }
 0x24c   :  { %v295_v28 = vpop.permute.xlu1 %294  ;;  %v826_v29 = vld [vmem:[#allocation2 + $0x50] sm:$0xff] }
 0x24d   :  { %v291_v27 = vpop.permute.xlu2 %290  ;;  %884 = vperm.xlu1 %2099, %v826_v29   ;;  %879 = vperm.xlu0 %2098, %v825_v30   ;;  %330 = vst.msk [vmem:[#allocation2 + $0x68] sm:$0xff] %vm316_vm1, %v295_v28  ;;  %v785_v29 = vunpack.c.1.s8 %v2366_v37 }
 0x24e   :  { %328 = vst.msk [vmem:[#allocation2 + $0x58] sm:$0xff] %vm316_vm1, %v291_v27  ;;  %v2428_v27 = vcvt.s32.f32 %v797_v21 }
 0x24f   :  { %v2438_v38 = vcvt.s32.f32 %v785_v29 }
 0x254   :  { %v829_v33 = vld [vmem:[#allocation2 + $0x68] sm:$0xff]  ;;  %v2359_v34 = vpop.permute.xlu1 %839 }
 0x255   :  { %v297_v31 = vpop.permute.xlu2 %296  ;;  %894 = vperm.xlu0 %2098, %v828_v32   ;;  %899 = vperm.xlu1 %2099, %v829_v33   ;;  %v827_v0 = vld [vmem:[#allocation2 + $0x58] sm:$0xff]  ;;  %v2063_v32 = vadd.f32 -1.0, %v2428_v27 }
 0x256   :  { %331 = vst.msk [vmem:[#allocation2 + $0x70] sm:$0xff] %vm316_vm1, %v297_v31 }
 0x257   :  { %v993_v46 = vmul.f32 1e+30, %v2063_v32 }
 0x25c   :  { %v2361_v36 = vpop.permute.xlu1 %849 }
 0x25d   :  { %v830_v4 = vld [vmem:[#allocation2 + $0x70] sm:$0xff] }
 0x264   :  { %v855_v44 = vpop.permute.xlu1 %854 }
 0x265   :  { %v920_v49 = vadd.f32 %v2377_v42, %v855_v44 }
 0x267   :  { %v936_v54 = vmul.f32 0.01, %v920_v49 }
 0x269   :  { %v952_v58 = vmax.f32 %v920_v49, %v936_v54 }
 0x26b   :  { %v2392_v61 = vadd.f32 %v984_v60, %v952_v58  ;;  %v790_v58 = vunpack.c.2.s8 %v2373_v40 }
 0x26c   :  { %v865_v1 = vpop.permute.xlu1 %864 }
 0x26d   :  { %v1041_v62 = vsel %vm1028_vm2, %v2392_v61, -inf }
 0x274   :  { %v2409_v9 = vpop.permute.xlu1 %874 }
 0x286   :  { %v299_v39 = vpop.permute.xlu0 %298 }
 0x287   :  { %332 = vst.msk [vmem:[#allocation2 + $0x78] sm:$0xff] %vm316_vm1, %v299_v39  ;;  %v917_v39 = vadd.f32 %v2380_v45, %v2359_v34 }
 0x28e   :  { %v835_v47 = vpop.permute.xlu0 %834  ;;  %v831_v48 = vld [vmem:[#allocation2 + $0x78] sm:$0xff] }
 0x28f   :  { %v916_v50 = vadd.f32 %v2380_v45, %v835_v47  ;;  %909 = vperm.xlu0 %2098, %v831_v48   ;;  %v2051_v47 = vadd.f32 -1.0, %v2438_v38  ;;  %v933_v48 = vmul.f32 0.01, %v917_v39 }
 0x291   :  { %v932_v52 = vmul.f32 0.01, %v916_v50  ;;  %v949_v54 = vmax.f32 %v917_v39, %v933_v48 }
 0x293   :  { %v948_v55 = vmax.f32 %v916_v50, %v932_v52  ;;  %v787_v50 = vunpack.c.3.s8 %v2366_v37 }
 0x295   :  { %v2388_v57 = vadd.f32 %v980_v53, %v948_v55  ;;  %v981_v53 = vmul.f32 1e+30, %v2051_v47  ;;  %v919_v55 = vadd.f32 %v2380_v45, %v2361_v36  ;;  %v2451_v56 = vcvt.s32.f32 %v787_v50 }
 0x296   :  { %v2398_v3 = vpop.permute.xlu0 %859  ;;  %v2200_v50 = vmov 0.0  }
 0x297   :  { %v1029_v59 = vsel %vm1028_vm2, %v2388_v57, -inf  ;;  %v2454_v60 = vadd.f32 %v981_v53, %v949_v54  ;;  %366 = vst.msk [vmem:[#allocation5 + $0x8] sm:$0xff] %vm91_vm0, %v2200_v50 }
 0x298   :  { %1030 = vmax.xlane.f32.xlu1 %v1029_v59  ;;  %v935_v59 = vmul.f32 0.01, %v919_v55  ;;  %349 = vst.msk [vmem:[#allocation4] sm:$0xff] %vm316_vm1, %v2200_v50 }
 0x299   :  { %v1032_v36 = vsel %vm1028_vm2, %v2454_v60, -inf  ;;  %350 = vst.msk [vmem:[#allocation4 + $0x8] sm:$0xff] %vm316_vm1, %v2200_v50 }
 0x29a   :  { %v951_v2 = vmax.f32 %v919_v55, %v935_v59  ;;  %351 = vst.msk [vmem:[#allocation4 + $0x10] sm:$0xff] %vm316_vm1, %v2200_v50  ;;  %v789_v55 = vunpack.c.1.s8 %v2373_v40  ;;  %v921_v40 = vadd.f32 %v2377_v42, %v2398_v3 }
 0x29b   :  { %2100 = vset.pattern.permute.xlu2 %v2198_v5  ;;  %v2405_v5 = vld [vmem:[%s3002_s2 + $0x10] sm:$0xff]  ;;  %352 = vst.msk [vmem:[#allocation4 + $0x18] sm:$0xff] %vm316_vm1, %v2200_v50 }
 0x29c   :  { %v794_v8 = vunpack.c.2.s8 %v2405_v5  ;;  %353 = vst.msk [vmem:[#allocation4 + $0x20] sm:$0xff] %vm316_vm1, %v2200_v50 }
 0x29d   :  { %354 = vst.msk [vmem:[#allocation4 + $0x28] sm:$0xff] %vm316_vm1, %v2200_v50 }
 0x29e   :  { %v2412_v14 = vcvt.s32.f32 %v794_v8  ;;  %355 = vst.msk [vmem:[#allocation4 + $0x30] sm:$0xff] %vm316_vm1, %v2200_v50 }
 0x29f   :  { %356 = vst.msk [vmem:[#allocation4 + $0x38] sm:$0xff] %vm316_vm1, %v2200_v50 }
 0x2a0   :  { %1042 = vmax.xlane.f32.xlu1 %v1041_v62  ;;  %v2060_v19 = vadd.f32 -1.0, %v2412_v14  ;;  %v2053_v62 = vadd.f32 -1.0, %v2451_v56  ;;  %357 = vst.msk [vmem:[#allocation4 + $0x40] sm:$0xff] %vm316_vm1, %v2200_v50 }
 0x2a1   :  { %358 = vst.msk [vmem:[#allocation4 + $0x48] sm:$0xff] %vm316_vm1, %v2200_v50 }
 0x2a2   :  { %844 = vperm.xlu2 %2100, %v818_v63   ;;  %v990_v26 = vmul.f32 1e+30, %v2060_v19  ;;  %v922_v63 = vadd.f32 %v2377_v42, %v865_v1  ;;  %359 = vst.msk [vmem:[#allocation4 + $0x50] sm:$0xff] %vm316_vm1, %v2200_v50 }
 0x2a3   :  { %360 = vst.msk [vmem:[#allocation4 + $0x58] sm:$0xff] %vm316_vm1, %v2200_v50 }
 0x2a4   :  { %v938_v7 = vmul.f32 0.01, %v922_v63  ;;  %361 = vst.msk [vmem:[#allocation4 + $0x60] sm:$0xff] %vm316_vm1, %v2200_v50 }
 0x2a5   :  { %362 = vst.msk [vmem:[#allocation4 + $0x68] sm:$0xff] %vm316_vm1, %v2200_v50 }
 0x2a6   :  { %363 = vst.msk [vmem:[#allocation4 + $0x70] sm:$0xff] %vm316_vm1, %v2200_v50 }
 0x2a7   :  { %364 = vst.msk [vmem:[#allocation4 + $0x78] sm:$0xff] %vm316_vm1, %v2200_v50 }
 0x2a8   :  { %365 = vst.msk [vmem:[#allocation5] sm:$0xff] %vm91_vm0, %v2200_v50 }
 0x2a9   :  { %367 = vst.msk [vmem:[#allocation5 + $0x10] sm:$0xff] %vm91_vm0, %v2200_v50 }
 0x2aa   :  { %889 = vperm.xlu2 %2100, %v827_v0   ;;  %v2458_v0 = vcvt.s32.f32 %v790_v58  ;;  %368 = vst.msk [vmem:[#allocation5 + $0x18] sm:$0xff] %vm91_vm0, %v2200_v50 }
 0x2ab   :  { %369 = vst.msk [vmem:[#allocation5 + $0x20] sm:$0xff] %vm91_vm0, %v2200_v50 }
 0x2ac   :  { %370 = vst.msk [vmem:[#allocation5 + $0x28] sm:$0xff] %vm91_vm0, %v2200_v50 }
 0x2ad   :  { %371 = vst.msk [vmem:[#allocation5 + $0x30] sm:$0xff] %vm91_vm0, %v2200_v50 }
 0x2ae   :  { %372 = vst.msk [vmem:[#allocation5 + $0x38] sm:$0xff] %vm91_vm0, %v2200_v50 }
 0x2af   :  { %373 = vst.msk [vmem:[#allocation5 + $0x40] sm:$0xff] %vm91_vm0, %v2200_v50 }
 0x2b0   :  { %374 = vst.msk [vmem:[#allocation5 + $0x48] sm:$0xff] %vm91_vm0, %v2200_v50 }
 0x2b1   :  { %375 = vst.msk [vmem:[#allocation5 + $0x50] sm:$0xff] %vm91_vm0, %v2200_v50 }
 0x2b2   :  { %904 = vperm.xlu2 %2100, %v830_v4   ;;  %v983_v4 = vmul.f32 1e+30, %v2053_v62  ;;  %376 = vst.msk [vmem:[#allocation5 + $0x58] sm:$0xff] %vm91_vm0, %v2200_v50 }
 0x2b3   :  { %377 = vst.msk [vmem:[#allocation5 + $0x60] sm:$0xff] %vm91_vm0, %v2200_v50 }
 0x2b4   :  { %378 = vst.msk [vmem:[#allocation5 + $0x68] sm:$0xff] %vm91_vm0, %v2200_v50 }
 0x2b5   :  { %379 = vst.msk [vmem:[#allocation5 + $0x70] sm:$0xff] %vm91_vm0, %v2200_v50 }
 0x2b6   :  { %380 = vst.msk [vmem:[#allocation5 + $0x78] sm:$0xff] %vm91_vm0, %v2200_v50 }
 0x2b7   :  { %v870_v10 = vpop.permute.xlu0 %869 }
 0x2b8   :  { %v923_v11 = vadd.f32 %v2377_v42, %v870_v10  ;;  %v2056_v10 = vadd.f32 -1.0, %v2458_v0  ;;  %v937_v42 = vmul.f32 0.01, %v921_v40 }
 0x2ba   :  { %v939_v12 = vmul.f32 0.01, %v923_v11  ;;  %v764_v25 = vpop.trf.xlu2 }
 0x2bb   :  { %v2431_v30 = vperm.slane %v764_v25, 0  ;;  %v796_v25 = vunpack.c.0.s8 %v2417_v16 }
 0x2bc   :  { %v955_v15 = vmax.f32 %v923_v11, %v939_v12  ;;  %v2463_v11 = vadd.f32 %v983_v4, %v951_v2  ;;  %v793_v12 = vunpack.c.1.s8 %v2405_v5  ;;  %v2532_v2 = vcvt.s32.f32 %v789_v55 }
 0x2be   :  { %v2421_v18 = vadd.f32 %v987_v13, %v955_v15  ;;  %v954_v13 = vmax.f32 %v922_v63, %v938_v7  ;;  %v986_v15 = vmul.f32 1e+30, %v2056_v10  ;;  %v1038_v19 = vsel %vm1028_vm2, %v2463_v11, -inf }
 0x2bf   :  { %v885_v20 = vpop.permute.xlu1 %884  ;;  %v880_v8 = vpop.permute.xlu0 %879  ;;  %v2055_v10 = vadd.f32 -1.0, %v2532_v2 }
 0x2c0   :  { %v926_v22 = vadd.f32 %v2419_v17, %v885_v20  ;;  %v1050_v23 = vsel %vm1028_vm2, %v2421_v18, -inf  ;;  %v925_v1 = vadd.f32 %v2419_v17, %v880_v8  ;;  %v2469_v20 = vcvt.s32.f32 %v793_v12 }
 0x2c1   :  { %1051 = vmax.xlane.f32.xlu1 %v1050_v23  ;;  %v2471_v21 = vadd.f32 %v986_v15, %v954_v13  ;;  %v792_v8 = vunpack.c.0.s8 %v2405_v5  ;;  %v924_v15 = vadd.f32 %v2419_v17, %v2409_v9 }
 0x2c2   :  { %v942_v24 = vmul.f32 0.01, %v926_v22  ;;  %v941_v23 = vmul.f32 0.01, %v925_v1 }
 0x2c3   :  { %v940_v9 = vmul.f32 0.01, %v924_v15 }
 0x2c4   :  { %v958_v28 = vmax.f32 %v926_v22, %v942_v24  ;;  %v2199_v22 = vmov -1e+30   ;;  %v2059_v24 = vadd.f32 -1.0, %v2469_v20  ;;  %v957_v29 = vmax.f32 %v925_v1, %v941_v23 }
 0x2c5   :  { %333 = vst.msk [vmem:[#allocation3] sm:$0xff] %vm316_vm1, %v2199_v22  ;;  %v953_v23 = vmax.f32 %v921_v40, %v937_v42 }
 0x2c6   :  { %v2433_v31 = vadd.f32 %v990_v26, %v958_v28  ;;  %334 = vst.msk [vmem:[#allocation3 + $0x8] sm:$0xff] %vm316_vm1, %v2199_v22  ;;  %v1047_v28 = vsel %vm1028_vm2, %v2471_v21, -inf }
 0x2c7   :  { %v900_v33 = vpop.permute.xlu1 %899  ;;  %v895_v26 = vpop.permute.xlu0 %894  ;;  %335 = vst.msk [vmem:[#allocation3 + $0x10] sm:$0xff] %vm316_vm1, %v2199_v22 }
 0x2c8   :  { %v1059_v35 = vsel %vm1028_vm2, %v2433_v31, -inf  ;;  %v929_v43 = vadd.f32 %v2431_v30, %v900_v33  ;;  %336 = vst.msk [vmem:[#allocation3 + $0x18] sm:$0xff] %vm316_vm1, %v2199_v22  ;;  %v928_v32 = vadd.f32 %v2431_v30, %v895_v26  ;;  %v989_v33 = vmul.f32 1e+30, %v2059_v24 }
 0x2c9   :  { %1060 = vmax.xlane.f32.xlu1 %v1059_v35  ;;  %337 = vst.msk [vmem:[#allocation3 + $0x20] sm:$0xff] %vm316_vm1, %v2199_v22  ;;  %v2483_v35 = vcvt.s32.f32 %v796_v25  ;;  %v985_v25 = vmul.f32 1e+30, %v2055_v10 }
 0x2ca   :  { %v945_v44 = vmul.f32 0.01, %v929_v43  ;;  %338 = vst.msk [vmem:[#allocation3 + $0x28] sm:$0xff] %vm316_vm1, %v2199_v22  ;;  %v944_v39 = vmul.f32 0.01, %v928_v32 }
 0x2cb   :  { %339 = vst.msk [vmem:[#allocation3 + $0x30] sm:$0xff] %vm316_vm1, %v2199_v22 }
 0x2cc   :  { %v961_v49 = vmax.f32 %v929_v43, %v945_v44  ;;  %340 = vst.msk [vmem:[#allocation3 + $0x38] sm:$0xff] %vm316_vm1, %v2199_v22  ;;  %v2489_v43 = vadd.f32 %v989_v33, %v957_v29  ;;  %v2062_v44 = vadd.f32 -1.0, %v2483_v35  ;;  %v2573_v33 = vld [vmem:[#allocation3] sm:$0xff] }
 0x2cd   :  { %341 = vst.msk [vmem:[#allocation3 + $0x40] sm:$0xff] %vm316_vm1, %v2199_v22 }
 0x2ce   :  { %v2445_v52 = vadd.f32 %v993_v46, %v961_v49  ;;  %342 = vst.msk [vmem:[#allocation3 + $0x48] sm:$0xff] %vm316_vm1, %v2199_v22  ;;  %v960_v46 = vmax.f32 %v928_v32, %v944_v39  ;;  %v1056_v47 = vsel %vm1028_vm2, %v2489_v43, -inf  ;;  %v992_v48 = vmul.f32 1e+30, %v2062_v44 }
 0x2cf   :  { %343 = vst.msk [vmem:[#allocation3 + $0x50] sm:$0xff] %vm316_vm1, %v2199_v22  ;;  %v786_v49 = vunpack.c.2.s8 %v2366_v37  ;;  %v799_v37 = vunpack.c.3.s8 %v2417_v16  ;;  %v2575_v39 = vadd.f32 %v985_v25, %v953_v23  ;;  %v795_v44 = vunpack.c.3.s8 %v2405_v5 }
 0x2d0   :  { %v1068_v34 = vsel %vm1028_vm2, %v2445_v52, -inf  ;;  %344 = vst.msk [vmem:[#allocation3 + $0x58] sm:$0xff] %vm316_vm1, %v2199_v22  ;;  %v2504_v53 = vadd.f32 %v992_v48, %v960_v46  ;;  %v956_v48 = vmax.f32 %v924_v15, %v940_v9  ;;  %v2609_v40 = vld [vmem:[#allocation3 + $0x20] sm:$0xff] }
 0x2d1   :  { %1069 = vmax.xlane.f32.xlu1 %v1068_v34  ;;  %345 = vst.msk [vmem:[#allocation3 + $0x60] sm:$0xff] %vm316_vm1, %v2199_v22  ;;  %v2508_v54 = vcvt.s32.f32 %v786_v49  ;;  %v2525_v62 = vcvt.s32.f32 %v799_v37  ;;  %v1044_v55 = vsel %vm1028_vm2, %v2575_v39, -inf }
 0x2d2   :  { %346 = vst.msk [vmem:[#allocation3 + $0x68] sm:$0xff] %vm316_vm1, %v2199_v22  ;;  %v1065_v34 = vsel %vm1028_vm2, %v2504_v53, -inf }
 0x2d3   :  { %347 = vst.msk [vmem:[#allocation3 + $0x70] sm:$0xff] %vm316_vm1, %v2199_v22  ;;  %v2052_v58 = vadd.f32 -1.0, %v2508_v54  ;;  %v2065_v7 = vadd.f32 -1.0, %v2525_v62 }
 0x2d4   :  { %348 = vst.msk [vmem:[#allocation3 + $0x78] sm:$0xff] %vm316_vm1, %v2199_v22  ;;  %v2556_v22 = vcvt.s32.f32 %v792_v8 }
 0x2d5   :  { %3007 = vst [vmem:[#allocation6_spill] sm:$0xff] %v2525_v62  ;;  %v982_v4 = vmul.f32 1e+30, %v2052_v58 }
 0x2d6   :  { %v2058_v32 = vadd.f32 -1.0, %v2556_v22 }
 0x2d8   :  { %v988_v37 = vmul.f32 1e+30, %v2058_v32  ;;  %v1017_v32 = vld [vmem:[#allocation3 + $0x28] sm:$0xff] }
 0x2db   :  { %1033 = vmax.xlane.f32.xlu2 %v1032_v36 }
 0x2e3   :  { %1039 = vmax.xlane.f32.xlu2 %v1038_v19  ;;  %v995_v19 = vmul.f32 1e+30, %v2065_v7 }
 0x2eb   :  { %1048 = vmax.xlane.f32.xlu2 %v1047_v28 }
 0x2f3   :  { %1057 = vmax.xlane.f32.xlu2 %v1056_v47 }
 0x2fb   :  { %1066 = vmax.xlane.f32.xlu2 %v1065_v34  ;;  %v2594_v34 = vcvt.s32.f32 %v795_v44  ;;  %v2655_v44 = vld [vmem:[#allocation3 + $0x50] sm:$0xff] }
 0x2fc   :  { %v845_v59 = vpop.permute.xlu2 %844 }
 0x2fd   :  { %v918_v63 = vadd.f32 %v2380_v45, %v845_v59 }
 0x2ff   :  { %v934_v36 = vmul.f32 0.01, %v918_v63 }
 0x301   :  { %v950_v45 = vmax.f32 %v918_v63, %v934_v36  ;;  %v910_v3 = vpop.permute.xlu0 %909  ;;  %v2061_v63 = vadd.f32 -1.0, %v2594_v34  ;;  %v798_v36 = vunpack.c.2.s8 %v2417_v16 }
 0x302   :  { %v931_v12 = vadd.f32 %v2431_v30, %v910_v3 }
 0x303   :  { %v2550_v13 = vadd.f32 %v982_v4, %v950_v45  ;;  %v991_v3 = vmul.f32 1e+30, %v2061_v63  ;;  %v2627_v10 = vcvt.s32.f32 %v798_v36  ;;  %v1013_v63 = vld [vmem:[#allocation3 + $0x8] sm:$0xff] }
 0x304   :  { %v947_v1 = vmul.f32 0.01, %v931_v12  ;;  %v890_v28 = vpop.permute.xlu2 %889 }
 0x305   :  { %v1035_v24 = vsel %vm1028_vm2, %v2550_v13, -inf  ;;  %v927_v5 = vadd.f32 %v2419_v17, %v890_v28  ;;  %v2605_v17 = vadd.f32 %v988_v37, %v956_v48  ;;  %3008 = vst [vmem:[#allocation7_spill] sm:$0xff] %v2627_v10  ;;  %v2665_v37 = vld [vmem:[#allocation3 + $0x68] sm:$0xff] }
 0x306   :  { %v963_v26 = vmax.f32 %v931_v12, %v947_v1  ;;  %1036 = vmax.xlane.f32.xlu0 %v1035_v24 }
 0x307   :  { %v943_v59 = vmul.f32 0.01, %v927_v5  ;;  %v1053_v42 = vsel %vm1028_vm2, %v2605_v17, -inf }
 0x308   :  { %v2568_v29 = vadd.f32 %v995_v19, %v963_v26  ;;  %v2645_v26 = vld [vmem:[#allocation3 + $0x38] sm:$0xff] }
 0x309   :  { %v959_v16 = vmax.f32 %v927_v5, %v943_v59 }
 0x30a   :  { %v1074_v46 = vsel %vm1028_vm2, %v2568_v29, -inf }
 0x30b   :  { %v1031_v47 = vpop.xlane.xlu1 %1030  ;;  %1075 = vmax.xlane.f32.xlu2 %v1074_v46  ;;  %v2636_v1 = vadd.f32 %v991_v3, %v959_v16 }
 0x30c   :  { %v2587_v49 = vmax.f32 %v2573_v33, %v1031_v47  ;;  %v905_v4 = vpop.permute.xlu2 %904 }
 0x30d   :  { %v930_v45 = vadd.f32 %v2431_v30, %v905_v4  ;;  %v2064_v30 = vadd.f32 -1.0, %v2627_v10  ;;  %v1062_v23 = vsel %vm1028_vm2, %v2636_v1, -inf }
 0x30e   :  { %1706 = vst.msk [vmem:[#allocation3] sm:$0xff] %vm316_vm1, %v2587_v49  ;;  %1045 = vmax.xlane.f32.xlu0 %v1044_v55  ;;  %1095 = vperm.xlu1 %2099, %v2587_v49  }
 0x30f   :  { %v946_v15 = vmul.f32 0.01, %v930_v45  ;;  %v994_v24 = vmul.f32 1e+30, %v2064_v30 }
 0x311   :  { %v962_v19 = vmax.f32 %v930_v45, %v946_v15  ;;  %v1018_v15 = vld [vmem:[#allocation3 + $0x30] sm:$0xff] }
 0x313   :  { %v1043_v7 = vpop.xlane.xlu1 %1042  ;;  %v2641_v50 = vadd.f32 %v994_v24, %v962_v19 }
 0x314   :  { %v2620_v8 = vmax.f32 %v2609_v40, %v1043_v7 }
 0x315   :  { %v1071_v25 = vsel %vm1028_vm2, %v2641_v50, -inf }
 0x316   :  { %1710 = vst.msk [vmem:[#allocation3 + $0x20] sm:$0xff] %vm316_vm1, %v2620_v8  ;;  %1054 = vmax.xlane.f32.xlu0 %v1053_v42  ;;  %1115 = vperm.xlu1 %2099, %v2620_v8   ;;  %v2676_v42 = vld [vmem:[#allocation3 + $0x18] sm:$0xff] }
 0x31e   :  { %1063 = vmax.xlane.f32.xlu0 %v1062_v23  ;;  %v1021_v23 = vld [vmem:[#allocation3 + $0x48] sm:$0xff] }
 0x326   :  { %1072 = vmax.xlane.f32.xlu0 %v1071_v25 }
 0x334   :  { %v1052_v9 = vpop.xlane.xlu1 %1051 }
 0x335   :  { %v2648_v28 = vmax.f32 %v2645_v26, %v1052_v9  ;;  %v1024_v9 = vld [vmem:[#allocation3 + $0x60] sm:$0xff] }
 0x337   :  { %1713 = vst.msk [vmem:[#allocation3 + $0x38] sm:$0xff] %vm316_vm1, %v2648_v28  ;;  %1130 = vperm.xlu1 %2099, %v2648_v28  }
 0x33c   :  { %v1061_v46 = vpop.xlane.xlu1 %1060 }
 0x33d   :  { %v2658_v47 = vmax.f32 %v2655_v44, %v1061_v46 }
 0x33f   :  { %1716 = vst.msk [vmem:[#allocation3 + $0x50] sm:$0xff] %vm316_vm1, %v2658_v47  ;;  %1145 = vperm.xlu1 %2099, %v2658_v47  }
 0x344   :  { %v1070_v5 = vpop.xlane.xlu1 %1069 }
 0x345   :  { %v2668_v55 = vmax.f32 %v2665_v37, %v1070_v5 }
 0x347   :  { %1719 = vst.msk [vmem:[#allocation3 + $0x68] sm:$0xff] %vm316_vm1, %v2668_v55  ;;  %1160 = vperm.xlu1 %2099, %v2668_v55  }
 0x34e   :  { %v1034_v36 = vpop.xlane.xlu2 %1033 }
 0x34f   :  { %v1078_v4 = vmax.f32 %v1013_v63, %v1034_v36 }
 0x351   :  { %v1238_v7 = vsub.f32 %v1013_v63, %v1078_v4  ;;  %1707 = vst.msk [vmem:[#allocation3 + $0x8] sm:$0xff] %vm316_vm1, %v1078_v4  ;;  %1100 = vperm.xlu0 %2098, %v1078_v4   ;;  %v1014_v63 = vld [vmem:[#allocation3 + $0x10] sm:$0xff] }
 0x353   :  { %v1255_v58 = vmul.f32 1.442695, %v1238_v7 }
 0x356   :  { %v1040_v16 = vpop.xlane.xlu2 %1039 }
 0x357   :  { %v2679_v45 = vmax.f32 %v2676_v42, %v1040_v16 }
 0x359   :  { %1709 = vst.msk [vmem:[#allocation3 + $0x18] sm:$0xff] %vm316_vm1, %v2679_v45  ;;  %1110 = vperm.xlu0 %2098, %v2679_v45  }
 0x35e   :  { %v1049_v30 = vpop.xlane.xlu2 %1048 }
 0x35f   :  { %v1083_v19 = vmax.f32 %v1018_v15, %v1049_v30  ;;  %v2690_v30 = vld [vmem:[#allocation3 + $0x78] sm:$0xff] }
 0x361   :  { %1712 = vst.msk [vmem:[#allocation3 + $0x30] sm:$0xff] %vm316_vm1, %v1083_v19  ;;  %v1243_v3 = vsub.f32 %v1018_v15, %v1083_v19 }
 0x363   :  { %v1265_v12 = vmul.f32 1.442695, %v1243_v3  ;;  %v1023_v3 = vld [vmem:[#allocation3 + $0x58] sm:$0xff] }
 0x366   :  { %v1058_v24 = vpop.xlane.xlu2 %1057 }
 0x367   :  { %v1086_v25 = vmax.f32 %v1021_v23, %v1058_v24 }
 0x369   :  { %1715 = vst.msk [vmem:[#allocation3 + $0x48] sm:$0xff] %vm316_vm1, %v1086_v25 }
 0x36e   :  { %v1067_v46 = vpop.xlane.xlu2 %1066 }
 0x36f   :  { %v1089_v5 = vmax.f32 %v1024_v9, %v1067_v46 }
 0x371   :  { %1718 = vst.msk [vmem:[#allocation3 + $0x60] sm:$0xff] %vm316_vm1, %v1089_v5 }
 0x379   :  { %v1037_v36 = vpop.xlane.xlu0 %1036 }
 0x37a   :  { %v1079_v4 = vmax.f32 %v1014_v63, %v1037_v36 }
 0x37c   :  { %v1239_v16 = vsub.f32 %v1014_v63, %v1079_v4  ;;  %1708 = vst.msk [vmem:[#allocation3 + $0x10] sm:$0xff] %vm316_vm1, %v1079_v4  ;;  %1105 = vperm.xlu2 %2100, %v1079_v4  }
 0x37e   :  { %v1257_v59 = vmul.f32 1.442695, %v1239_v16  ;;  %v1076_v48 = vpop.xlane.xlu2 %1075 }
 0x37f   :  { %v2693_v24 = vmax.f32 %v2690_v30, %v1076_v48  ;;  %v1020_v48 = vld [vmem:[#allocation3 + $0x40] sm:$0xff] }
 0x380   :  { %2101 = vpow2.f32 %v1257_v59  ;;  %v1246_v59 = vsub.f32 %v1021_v23, %v1086_v25  ;;  %v1026_v23 = vld [vmem:[#allocation3 + $0x70] sm:$0xff] }
 0x381   :  { %1721 = vst.msk [vmem:[#allocation3 + $0x78] sm:$0xff] %vm316_vm1, %v2693_v24  ;;  %v1046_v63 = vpop.xlane.xlu0 %1045  ;;  %2103 = vpow2.f32 %v1265_v12 }
 0x382   :  { %v1082_v36 = vmax.f32 %v1017_v32, %v1046_v63  ;;  %v1271_v46 = vmul.f32 1.442695, %v1246_v59 }
 0x384   :  { %1711 = vst.msk [vmem:[#allocation3 + $0x28] sm:$0xff] %vm316_vm1, %v1082_v36  ;;  %1125 = vperm.xlu2 %2100, %v1083_v19   ;;  %1120 = vperm.xlu0 %2098, %v1082_v36   ;;  %2105 = vpow2.f32 %v1271_v46  ;;  %v1249_v19 = vsub.f32 %v1024_v9, %v1089_v5 }
 0x385   :  { %2107 = vpow2.f32 %v1255_v58 }
 0x386   :  { %v2700_v4 = vpop.eup %2101  ;;  %v1277_v62 = vmul.f32 1.442695, %v1249_v19  ;;  %v3013_v19 = vsub.f32 %v2645_v26, %v2648_v28 }
 0x387   :  { %3009 = vst [vmem:[#allocation8_spill] sm:$0xff] %v2700_v4  ;;  %1426 = vperm.xlu1 %2099, %v2700_v4   ;;  %v2704_v63 = vpop.eup %2103 }
 0x388   :  { %2109 = vpow2.f32 %v1277_v62  ;;  %v3011_v62 = vsub.f32 %v2609_v40, %v2620_v8 }
 0x389   :  { %v1055_v15 = vpop.xlane.xlu0 %1054 }
 0x38a   :  { %v1085_v16 = vmax.f32 %v1020_v48, %v1055_v15  ;;  %v2708_v12 = vpop.eup %2105  ;;  %v1242_v15 = vsub.f32 %v1017_v32, %v1082_v36  ;;  %v1096_v36 = vpop.permute.xlu1 %1095 }
 0x38b   :  { %v2714_v59 = vpop.eup %2107 }
 0x38c   :  { %1714 = vst.msk [vmem:[#allocation3 + $0x40] sm:$0xff] %vm316_vm1, %v1085_v16  ;;  %1140 = vperm.xlu2 %2100, %v1086_v25   ;;  %1135 = vperm.xlu0 %2098, %v1085_v16   ;;  %v3010_v25 = vsub.f32 %v2573_v33, %v2587_v49  ;;  %v3012_v33 = vsub.f32 %v2676_v42, %v2679_v45 }
 0x38d   :  { %v1245_v42 = vsub.f32 %v1020_v48, %v1085_v16  ;;  %v3014_v45 = vsub.f32 %v2655_v44, %v2658_v47  ;;  %v3015_v44 = vsub.f32 %v2665_v37, %v2668_v55 }
 0x38e   :  { %v1253_v46 = vmul.f32 1.442695, %v3010_v25  ;;  %v2718_v58 = vpop.eup %2109  ;;  %v1259_v49 = vmul.f32 1.442695, %v3012_v33  ;;  %v1267_v25 = vmul.f32 1.442695, %v3013_v19 }
 0x38f   :  { %1446 = vperm.xlu1 %2099, %v2704_v63   ;;  %v1273_v32 = vmul.f32 1.442695, %v3014_v45  ;;  %v1279_v47 = vmul.f32 1.442695, %v3015_v44 }
 0x390   :  { %2111 = vpow2.f32 %v1253_v46  ;;  %v1263_v46 = vmul.f32 1.442695, %v1242_v15 }
 0x391   :  { %v1064_v10 = vpop.xlane.xlu0 %1063 }
 0x392   :  { %v1088_v4 = vmax.f32 %v1023_v3, %v1064_v10  ;;  %v1261_v10 = vmul.f32 1.442695, %v3011_v62  ;;  %v1173_v62 = vsub.f32 %v2388_v57, %v1096_v36 }
 0x394   :  { %1717 = vst.msk [vmem:[#allocation3 + $0x58] sm:$0xff] %vm316_vm1, %v1088_v4  ;;  %1155 = vperm.xlu2 %2100, %v1089_v5   ;;  %1150 = vperm.xlu0 %2098, %v1088_v4   ;;  %2113 = vpow2.f32 %v1261_v10  ;;  %v1248_v10 = vsub.f32 %v1023_v3, %v1088_v4  ;;  %v1189_v48 = vmul.f32 1.442695, %v1173_v62 }
 0x395   :  { %2115 = vpow2.f32 %v1259_v49 }
 0x396   :  { %v2727_v5 = vpop.eup %2111  ;;  %2117 = vpow2.f32 %v1267_v25  ;;  %v1275_v16 = vmul.f32 1.442695, %v1248_v10 }
 0x397   :  { %1461 = vperm.xlu1 %2099, %v2708_v12   ;;  %2119 = vpow2.f32 %v1263_v46  ;;  %v1116_v46 = vpop.permute.xlu1 %1115 }
 0x398   :  { %2121 = vpow2.f32 %v1273_v32 }
 0x399   :  { %v1073_v9 = vpop.xlane.xlu0 %1072 }
 0x39a   :  { %v1091_v7 = vmax.f32 %v1026_v23, %v1073_v9  ;;  %v2734_v40 = vpop.eup %2113  ;;  %v1269_v9 = vmul.f32 1.442695, %v1245_v42 }
 0x39b   :  { %v2736_v8 = vpop.eup %2115 }
 0x39c   :  { %1720 = vst.msk [vmem:[#allocation3 + $0x70] sm:$0xff] %vm316_vm1, %v1091_v7  ;;  %1421 = vperm.xlu2 %2100, %v2714_v59   ;;  %1165 = vperm.xlu0 %2098, %v1091_v7   ;;  %v2743_v26 = vpop.eup %2117  ;;  %2123 = vpow2.f32 %v1269_v9  ;;  %v1251_v57 = vsub.f32 %v1026_v23, %v1091_v7 }
 0x39d   :  { %v2745_v28 = vpop.eup %2119  ;;  %2125 = vpow2.f32 %v1189_v48 }
 0x39e   :  { %v2753_v33 = vpop.eup %2121  ;;  %2127 = vpow2.f32 %v1279_v47  ;;  %v1281_v4 = vmul.f32 1.442695, %v1251_v57 }
 0x39f   :  { %1476 = vperm.xlu1 %2099, %v2718_v58   ;;  %2129 = vpow2.f32 %v1275_v16  ;;  %v3016_v16 = vsub.f32 %v2690_v30, %v2693_v24 }
 0x3a0   :  { %2131 = vpow2.f32 %v1281_v4 }
 0x3a1   :  { %v1283_v57 = vmul.f32 1.442695, %v3016_v16 }
 0x3a2   :  { %v2755_v49 = vpop.eup %2123 }
 0x3a3   :  { %v2126_v15 = vpop.eup %2125 }
 0x3a4   :  { %1170 = vperm.xlu2 %2100, %v2693_v24   ;;  %1416 = vperm.xlu0 %2098, %v2727_v5   ;;  %v2759_v3 = vpop.eup %2127  ;;  %v1221_v25 = vmul.f32 %v2126_v15, %v2375_v41 }
 0x3a5   :  { %v2761_v19 = vpop.eup %2129 }
 0x3a6   :  { %v1317_v23 = vsel %vm1028_vm2, %v1221_v25, 0.0  ;;  %v2768_v7 = vpop.eup %2131  ;;  %v1510_v62 = vpack.c.bf16 %v1221_v25, %v1221_v25 }
 0x3a8   :  { %v1530_v48 = vunpack.c.l.b16 %v1510_v62 }
 0x3a9   :  { %v1131_v36 = vpop.permute.xlu1 %1130 }
 0x3ac   :  { %1436 = vperm.xlu2 %2100, %v2734_v40   ;;  %1431 = vperm.xlu0 %2098, %v2736_v8  }
 0x3b4   :  { %1451 = vperm.xlu2 %2100, %v2743_v26   ;;  %1441 = vperm.xlu0 %2098, %v2745_v28  }
 0x3bc   :  { %1466 = vperm.xlu2 %2100, %v2753_v33   ;;  %1456 = vperm.xlu0 %2098, %v2755_v49  }
 0x3c3   :  { %v1101_v37 = vpop.permute.xlu0 %1100 }
 0x3c4   :  { %v1174_v55 = vsub.f32 %v2454_v60, %v1101_v37  ;;  %1481 = vperm.xlu2 %2100, %v2759_v3   ;;  %1471 = vperm.xlu0 %2098, %v2761_v19  }
 0x3c6   :  { %v1191_v42 = vmul.f32 1.442695, %v1174_v55 }
 0x3c8   :  { %2133 = vpow2.f32 %v1191_v42 }
 0x3c9   :  { %1318 = vadd.xlane.f32.xlu1 %v1317_v23 }
 0x3cb   :  { %v1111_v45 = vpop.permute.xlu0 %1110 }
 0x3cc   :  { %1486 = vperm.xlu0 %2098, %v2768_v7   ;;  %v1176_v60 = vsub.f32 %v2463_v11, %v1111_v45  ;;  %v1146_v11 = vpop.permute.xlu1 %1145 }
 0x3ce   :  { %v2134_v32 = vpop.eup %2133  ;;  %v1195_v10 = vmul.f32 1.442695, %v1176_v60 }
 0x3cf   :  { %v1222_v9 = vmul.f32 %v2134_v32, %v2438_v38 }
 0x3d0   :  { %2135 = vpow2.f32 %v1195_v10 }
 0x3d1   :  { %v1511_v41 = vpack.c.bf16 %v1222_v9, %v1222_v9  ;;  %2137 = vpow2.f32 %v1283_v57 }
 0x3d3   :  { %v1531_v44 = vunpack.c.l.b16 %v1511_v41 }
 0x3d4   :  { %v1161_v45 = vpop.permute.xlu1 %1160 }
 0x3d5   :  { %v1534_v47 = vpack.c.b16 %v1531_v44, %v1530_v48  ;;  %v1186_v60 = vsub.f32 %v2445_v52, %v1161_v45  ;;  %v1180_v52 = vsub.f32 %v2421_v18, %v1131_v36 }
 0x3d6   :  { %v1106_v15 = vpop.permute.xlu2 %1105  ;;  %v2136_v38 = vpop.eup %2135 }
 0x3d7   :  { %v1175_v4 = vsub.f32 %v2550_v13, %v1106_v15  ;;  %2066 = vmatmul.msk.bf16.vlgmr.msrb.gmra.mxu0 %vm1028_vm2, %v1534_v47  ;;  %v2779_v25 = vmul.f32 %v2136_v38, %v2451_v56  ;;  %v2781_v42 = vpop.eup %2137  ;;  %v1177_v56 = vsub.f32 %v2392_v61, %v1116_v46  ;;  %v1215_v48 = vmul.f32 1.442695, %v1186_v60 }
 0x3d8   :  { %v1320_v61 = vsel %vm1028_vm2, %v1222_v9, 0.0 }
 0x3d9   :  { %v1193_v37 = vmul.f32 1.442695, %v1175_v4  ;;  %v1513_v13 = vpack.c.bf16 %v2779_v25, %v2779_v25  ;;  %v1197_v44 = vmul.f32 1.442695, %v1177_v56  ;;  %v1203_v4 = vmul.f32 1.442695, %v1180_v52 }
 0x3db   :  { %2139 = vpow2.f32 %v1193_v37  ;;  %v1533_v41 = vunpack.c.l.b16 %v1513_v13 }
 0x3dc   :  { %2141 = vpow2.f32 %v1215_v48 }
 0x3dd   :  { %2143 = vpow2.f32 %v1197_v44 }
 0x3de   :  { %v1126_v55 = vpop.permute.xlu2 %1125 }
 0x3e1   :  { %v2140_v23 = vpop.eup %2139 }
 0x3e2   :  { %1491 = vperm.xlu1 %2099, %v2781_v42   ;;  %v1223_v30 = vmul.f32 %v2140_v23, %v2508_v54  ;;  %v2142_v15 = vpop.eup %2141 }
 0x3e3   :  { %v2144_v46 = vpop.eup %2143  ;;  %v2795_v37 = vmul.f32 %v2142_v15, %v2428_v27 }
 0x3e4   :  { %v1512_v24 = vpack.c.bf16 %v1223_v30, %v1223_v30  ;;  %v1323_v47 = vsel %vm1028_vm2, %v1223_v30, 0.0  ;;  %v1225_v13 = vmul.f32 %v2144_v46, %v2385_v51 }
 0x3e5   :  { %v1523_v27 = vpack.c.bf16 %v2795_v37, %v2795_v37 }
 0x3e6   :  { %v1141_v32 = vpop.permute.xlu2 %1140  ;;  %v1532_v62 = vunpack.c.l.b16 %v1512_v24  ;;  %v1514_v44 = vpack.c.bf16 %v1225_v13, %v1225_v13 }
 0x3e7   :  { %v1182_v38 = vsub.f32 %v2489_v43, %v1141_v32  ;;  %v1179_v43 = vsub.f32 %v2471_v21, %v1126_v55 }
 0x3e8   :  { %v1535_v10 = vpack.c.b16 %v1533_v41, %v1532_v62  ;;  %v1642_v62 = vunpack.c.l.b16 %v1523_v27 }
 0x3e9   :  { %v1207_v9 = vmul.f32 1.442695, %v1182_v38 }
 0x3ea   :  { %2067 = vmatmul.msk.bf16.gmra.mxu0 %vm1028_vm2, %v1535_v10 }
 0x3ed   :  { %1324 = vadd.xlane.f32.xlu2 %v1323_v47 }
 0x3ee   :  { %v1156_v54 = vpop.permute.xlu2 %1155 }
 0x3ef   :  { %v1185_v16 = vsub.f32 %v2504_v53, %v1156_v54  ;;  %v1183_v53 = vsub.f32 %v2433_v31, %v1146_v11  ;;  %v1329_v11 = vsel %vm1028_vm2, %v1225_v13, 0.0 }
 0x3f1   :  { %v1213_v57 = vmul.f32 1.442695, %v1185_v16 }
 0x3f3   :  { %2145 = vpow2.f32 %v1213_v57 }
 0x3f4   :  { %2147 = vpow2.f32 %v1203_v4  ;;  %v1567_v4 = vunpack.c.l.b16 %v1514_v44 }
 0x3f6   :  { %1321 = vadd.xlane.f32.xlu0 %v1320_v61  ;;  %v1121_v23 = vpop.permute.xlu0 %1120  ;;  %v2800_v18 = vpop.permute.xlu2 %1421 }
 0x3f7   :  { %v1178_v45 = vsub.f32 %v2575_v39, %v1121_v23  ;;  %v1209_v39 = vmul.f32 1.442695, %v1183_v53 }
 0x3f9   :  { %v2146_v36 = vpop.eup %2145  ;;  %v1199_v30 = vmul.f32 1.442695, %v1178_v45 }
 0x3fa   :  { %v2804_v24 = vmul.f32 %v2146_v36, %v2483_v35  ;;  %v2148_v60 = vpop.eup %2147  ;;  %v1201_v35 = vmul.f32 1.442695, %v1179_v43 }
 0x3fb   :  { %2149 = vpow2.f32 %v1199_v30  ;;  %v1228_v55 = vmul.f32 %v2148_v60, %v2400_v6 }
 0x3fc   :  { %v1522_v31 = vpack.c.bf16 %v2804_v24, %v2804_v24  ;;  %2151 = vpow2.f32 %v1207_v9 }
 0x3fd   :  { %2153 = vpow2.f32 %v1209_v39  ;;  %v1338_v57 = vsel %vm1028_vm2, %v1228_v55, 0.0 }
 0x3fe   :  { %1330 = vadd.xlane.f32.xlu0 %v1329_v11  ;;  %v1136_v51 = vpop.permute.xlu0 %1135  ;;  %v1641_v32 = vunpack.c.l.b16 %v1522_v31  ;;  %v1171_v48 = vpop.permute.xlu2 %1170  ;;  %2155 = vpow2.f32 %v1201_v35 }
 0x3ff   :  { %v1181_v41 = vsub.f32 %v2605_v17, %v1136_v51  ;;  %v1188_v17 = vsub.f32 %v2568_v29, %v1171_v48  ;;  %v1326_v29 = vsel %vm1028_vm2, %v2779_v25, 0.0 }
 0x400   :  { %v1645_v56 = vpack.c.b16 %v1642_v62, %v1641_v32  ;;  %v1517_v32 = vpack.c.bf16 %v1228_v55, %v1228_v55  ;;  %v3017_v55 = vld [vmem:[#allocation6_spill] sm:$0xff] }
 0x401   :  { %v2150_v10 = vpop.eup %2149  ;;  %v1205_v21 = vmul.f32 1.442695, %v1181_v41  ;;  %v1219_v45 = vmul.f32 1.442695, %v1188_v17 }
 0x402   :  { %2072 = vmatmul.msk.bf16.vlgmr.msrb.gmra.mxu3 %vm1028_vm2, %v1645_v56  ;;  %v1226_v47 = vmul.f32 %v2150_v10, %v2532_v2  ;;  %v2152_v54 = vpop.eup %2151  ;;  %v2836_v10 = vpop.permute.xlu1 %1426 }
 0x403   :  { %2157 = vpow2.f32 %v1205_v21  ;;  %v2154_v15 = vpop.eup %2153  ;;  %v1230_v46 = vmul.f32 %v2152_v54, %v2469_v20  ;;  %v1570_v21 = vunpack.c.l.b16 %v1517_v32  ;;  %v3018_v54 = vld [vmem:[#allocation7_spill] sm:$0xff] }
 0x404   :  { %v1332_v16 = vsel %vm1028_vm2, %v1226_v47, 0.0  ;;  %v1515_v52 = vpack.c.bf16 %v1226_v47, %v1226_v47  ;;  %v2156_v23 = vpop.eup %2155  ;;  %v1231_v36 = vmul.f32 %v2154_v15, %v2412_v14 }
 0x405   :  { %1333 = vadd.xlane.f32.xlu2 %v1332_v16  ;;  %v1519_v9 = vpack.c.bf16 %v1230_v46, %v1230_v46  ;;  %v1227_v20 = vmul.f32 %v2156_v23, %v2458_v0 }
 0x406   :  { %v1568_v6 = vunpack.c.l.b16 %v1515_v52  ;;  %1339 = vadd.xlane.f32.xlu0 %v1338_v57  ;;  %v1151_v61 = vpop.permute.xlu0 %1150  ;;  %v1347_v43 = vsel %vm1028_vm2, %v1231_v36, 0.0  ;;  %v1520_v17 = vpack.c.bf16 %v1231_v36, %v1231_v36  ;;  %v1344_v57 = vsel %vm1028_vm2, %v1230_v46, 0.0 }
 0x407   :  { %v1184_v2 = vsub.f32 %v2636_v1, %v1151_v61  ;;  %v1605_v31 = vunpack.c.l.b16 %v1519_v9  ;;  %v1516_v25 = vpack.c.bf16 %v1227_v20, %v1227_v20  ;;  %v1335_v35 = vsel %vm1028_vm2, %v1227_v20, 0.0  ;;  %v2854_v20 = vpop.permute.xlu2 %1436 }
 0x408   :  { %v1571_v38 = vpack.c.b16 %v1568_v6, %v1567_v4  ;;  %v1353_v46 = vsel %vm1028_vm2, %v2804_v24, 0.0 }
 0x409   :  { %v1211_v53 = vmul.f32 1.442695, %v1184_v2  ;;  %v2158_v30 = vpop.eup %2157  ;;  %v1569_v41 = vunpack.c.l.b16 %v1516_v25  ;;  %v1606_v2 = vunpack.c.l.b16 %v1520_v17 }
 0x40a   :  { %2068 = vmatmul.msk.bf16.vlgmr.msrb.gmra.mxu1 %vm1028_vm2, %v1571_v38  ;;  %v1229_v13 = vmul.f32 %v2158_v30, %v2556_v22  ;;  %v2843_v38 = vpop.permute.xlu1 %1446 }
 0x40b   :  { %2159 = vpow2.f32 %v1211_v53  ;;  %v1572_v48 = vpack.c.b16 %v1570_v21, %v1569_v41 }
 0x40c   :  { %1327 = vadd.xlane.f32.xlu1 %v1326_v29  ;;  %2161 = vpow2.f32 %v1219_v45  ;;  %v1341_v1 = vsel %vm1028_vm2, %v1229_v13, 0.0  ;;  %v1518_v27 = vpack.c.bf16 %v1229_v13, %v1229_v13  ;;  %v1285_v13 = vld [vmem:[#allocation4] sm:$0xff] }
 0x40d   :  { %1342 = vadd.xlane.f32.xlu2 %v1341_v1  ;;  %v1301_v1 = vmul.f32 %v2727_v5, %v1285_v13 }
 0x40e   :  { %1348 = vadd.xlane.f32.xlu0 %v1347_v43  ;;  %v1166_v14 = vpop.permute.xlu0 %1165  ;;  %v1604_v39 = vunpack.c.l.b16 %v1518_v27 }
 0x40f   :  { %v1187_v11 = vsub.f32 %v2641_v50, %v1166_v14  ;;  %v1356_v50 = vsel %vm1028_vm2, %v2795_v37, 0.0  ;;  %v2860_v14 = vpop.permute.xlu2 %1451 }
 0x410   :  { %v1608_v22 = vpack.c.b16 %v1605_v31, %v1604_v39 }
 0x411   :  { %v2160_v60 = vpop.eup %2159  ;;  %v1217_v51 = vmul.f32 1.442695, %v1187_v11 }
 0x412   :  { %v1232_v0 = vmul.f32 %v2160_v60, %v2594_v34  ;;  %v2162_v62 = vpop.eup %2161  ;;  %2070 = vmatmul.msk.bf16.vlgmr.msrb.gmra.mxu2 %vm1028_vm2, %v1608_v22  ;;  %v2849_v53 = vpop.permute.xlu1 %1461  ;;  %v1398_v22 = vld [vmem:[#allocation5] sm:$0xff] }
 0x413   :  { %2163 = vpow2.f32 %v1217_v51  ;;  %v1236_v34 = vmul.f32 %v2162_v62, %v3017_v55  ;;  %v1399_v62 = vld [vmem:[#allocation5 + $0x8] sm:$0xff]  ;;  %v3019_v55 = vld [vmem:[#allocation8_spill] sm:$0xff] }
 0x414   :  { %1336 = vadd.xlane.f32.xlu1 %v1335_v35  ;;  %v1350_v56 = vsel %vm1028_vm2, %v1232_v0, 0.0  ;;  %v1521_v47 = vpack.c.bf16 %v1232_v0, %v1232_v0  ;;  %v1495_v41 = vmul.f32 %v2800_v18, %v1399_v62 }
 0x415   :  { %1351 = vadd.xlane.f32.xlu2 %v1350_v56  ;;  %v1525_v52 = vpack.c.bf16 %v1236_v34, %v1236_v34  ;;  %v1362_v36 = vsel %vm1028_vm2, %v1236_v34, 0.0 }
 0x416   :  { %1357 = vadd.xlane.f32.xlu0 %v1356_v50  ;;  %v1607_v4 = vunpack.c.l.b16 %v1521_v47  ;;  %v1417_v30 = vpop.permute.xlu0 %1416  ;;  %v1287_v50 = vld [vmem:[#allocation4 + $0x10] sm:$0xff] }
 0x417   :  { %v1644_v61 = vunpack.c.l.b16 %v1525_v52  ;;  %v2864_v25 = vpop.permute.xlu2 %1466  ;;  %v1494_v5 = vmul.f32 %v1417_v30, %v1398_v22  ;;  %v1303_v34 = vmul.f32 %v3019_v55, %v1287_v50 }
 0x418   :  { %v1609_v45 = vpack.c.b16 %v1607_v4, %v1606_v2  ;;  %v1289_v2 = vld [vmem:[#allocation4 + $0x20] sm:$0xff] }
 0x419   :  { %v2164_v44 = vpop.eup %2163 }
 0x41a   :  { %2069 = vmatmul.msk.bf16.gmra.mxu1 %vm1028_vm2, %v1572_v48  ;;  %v1235_v16 = vmul.f32 %v2164_v44, %v3018_v54  ;;  %v2852_v29 = vpop.permute.xlu1 %1476  ;;  %v1400_v54 = vld [vmem:[#allocation5 + $0x10] sm:$0xff] }
 0x41b   :  { %v1496_v52 = vmul.f32 %v2836_v10, %v1400_v54  ;;  %v1305_v10 = vmul.f32 %v2734_v40, %v1289_v2 }
 0x41c   :  { %1345 = vadd.xlane.f32.xlu1 %v1344_v57  ;;  %v1359_v37 = vsel %vm1028_vm2, %v1235_v16, 0.0  ;;  %v1524_v15 = vpack.c.bf16 %v1235_v16, %v1235_v16  ;;  %v1286_v16 = vld [vmem:[#allocation4 + $0x8] sm:$0xff] }
 0x41d   :  { %1360 = vadd.xlane.f32.xlu2 %v1359_v37  ;;  %v1302_v18 = vmul.f32 %v2714_v59, %v1286_v16 }
 0x41e   :  { %v1643_v6 = vunpack.c.l.b16 %v1524_v15  ;;  %v1432_v9 = vpop.permute.xlu0 %1431 }
 0x41f   :  { %v2869_v35 = vpop.permute.xlu2 %1481 }
 0x420   :  { %v1646_v23 = vpack.c.b16 %v1644_v61, %v1643_v6  ;;  %v1401_v6 = vld [vmem:[#allocation5 + $0x18] sm:$0xff] }
 0x422   :  { %2073 = vmatmul.msk.bf16.gmra.mxu3 %vm1028_vm2, %v1646_v23  ;;  %2071 = vmatmul.msk.bf16.gmra.mxu2 %vm1028_vm2, %v1609_v45  ;;  %v1497_v23 = vmul.f32 %v1432_v9, %v1401_v6  ;;  %v1298_v6 = vld [vmem:[#allocation4 + $0x68] sm:$0xff] }
 0x424   :  { %1354 = vadd.xlane.f32.xlu1 %v1353_v46 }
 0x426   :  { %v2858_v24 = vpop.permute.xlu0 %1441 }
 0x42c   :  { %1363 = vadd.xlane.f32.xlu1 %v1362_v36 }
 0x42e   :  { %v2862_v11 = vpop.permute.xlu0 %1456 }
 0x436   :  { %v2866_v0 = vpop.permute.xlu0 %1471 }
 0x43c   :  { %v1319_v27 = vpop.xlane.xlu1 %1318 }
 0x43d   :  { %v1365_v43 = vadd.f32 %v1319_v27, %v1301_v1  ;;  %v1290_v1 = vld [vmem:[#allocation4 + $0x28] sm:$0xff]  ;;  %v1292_v27 = vld [vmem:[#allocation4 + $0x38] sm:$0xff] }
 0x43e   :  { %v2874_v44 = vpop.permute.xlu0 %1486  ;;  %v1306_v9 = vmul.f32 %v2745_v28, %v1290_v1  ;;  %v1308_v40 = vmul.f32 %v2743_v26, %v1292_v27 }
 0x43f   :  { %1382 = vst.msk [vmem:[#allocation4] sm:$0xff] %vm316_vm1, %v1365_v43 }
 0x446   :  { %v1725_v39 = vld [vmem:[#allocation4] sm:$0xff] }
 0x447   :  { %vm1741_vm3 = vcmp.gt.f32.partialorder %v1725_v39, 0.0 }
 0x448   :  { %v1757_v31 = vsel %vm1741_vm3, %v1725_v39, 1.0 }
 0x449   :  { %2165 = vrcp.f32 %v1757_v31 }
 0x44f   :  { %v2166_v60 = vpop.eup %2165 }
 0x450   :  { %1807 = vperm.xlu2 %2100, %v2166_v60  }
 0x454   :  { %v1553_v51 = vpop.f32.mrf.mxu0  ;;  %v2884_v39 = vpop.permute.xlu1 %1491 }
 0x455   :  { %v1674_v32 = vadd.f32 %v1553_v51, %v1494_v5  ;;  %v1288_v51 = vld [vmem:[#allocation4 + $0x18] sm:$0xff] }
 0x456   :  { %v1304_v28 = vmul.f32 %v2736_v8, %v1288_v51 }
 0x457   :  { %1690 = vst.msk [vmem:[#allocation5] sm:$0xff] %vm91_vm0, %v1674_v32 }
 0x45c   :  { %v1555_v56 = vpop.f32.mrf.mxu0 }
 0x45d   :  { %v1675_v21 = vadd.f32 %v1555_v56, %v1495_v41  ;;  %v1293_v41 = vld [vmem:[#allocation4 + $0x40] sm:$0xff]  ;;  %v1295_v56 = vld [vmem:[#allocation4 + $0x50] sm:$0xff] }
 0x45e   :  { %v1309_v55 = vmul.f32 %v2755_v49, %v1293_v41 }
 0x45f   :  { %1691 = vst.msk [vmem:[#allocation5 + $0x8] sm:$0xff] %vm91_vm0, %v1675_v21 }
 0x460   :  { %v1325_v48 = vpop.xlane.xlu2 %1324 }
 0x461   :  { %v1367_v47 = vadd.f32 %v1325_v48, %v1303_v34  ;;  %v1311_v34 = vmul.f32 %v2753_v33, %v1295_v56  ;;  %v1410_v48 = vld [vmem:[#allocation5 + $0x60] sm:$0xff] }
 0x463   :  { %1384 = vst.msk [vmem:[#allocation4 + $0x10] sm:$0xff] %vm316_vm1, %v1367_v47 }
 0x467   :  { %v1558_v17 = vpop.f32.mrf.mxu0 }
 0x468   :  { %v1676_v57 = vadd.f32 %v1558_v17, %v1496_v52 }
 0x469   :  { %v1322_v37 = vpop.xlane.xlu0 %1321 }
 0x46a   :  { %1692 = vst.msk [vmem:[#allocation5 + $0x10] sm:$0xff] %vm91_vm0, %v1676_v57  ;;  %v1366_v15 = vadd.f32 %v1322_v37, %v1302_v18  ;;  %v1727_v4 = vld [vmem:[#allocation4 + $0x10] sm:$0xff]  ;;  %v1402_v57 = vld [vmem:[#allocation5 + $0x20] sm:$0xff] }
 0x46b   :  { %vm1743_vm4 = vcmp.gt.f32.partialorder %v1727_v4, 0.0  ;;  %v1291_v18 = vld [vmem:[#allocation4 + $0x30] sm:$0xff]  ;;  %v1498_v2 = vmul.f32 %v2854_v20, %v1402_v57 }
 0x46c   :  { %1383 = vst.msk [vmem:[#allocation4 + $0x8] sm:$0xff] %vm316_vm1, %v1366_v15  ;;  %v1759_v61 = vsel %vm1743_vm4, %v1727_v4, 1.0  ;;  %v1506_v15 = vmul.f32 %v2852_v29, %v1410_v48  ;;  %v1296_v4 = vld [vmem:[#allocation4 + $0x58] sm:$0xff]  ;;  %vm1917_vm4 = vcmask 125952  }
 0x46d   :  { %2167 = vrcp.f32 %v1759_v61 }
 0x46f   :  { %v1560_v45 = vpop.f32.mrf.mxu0 }
 0x470   :  { %v1677_v46 = vadd.f32 %v1560_v45, %v1497_v23  ;;  %v1307_v45 = vmul.f32 %v2704_v63, %v1291_v18  ;;  %v1294_v63 = vld [vmem:[#allocation4 + $0x48] sm:$0xff] }
 0x471   :  { %v1331_v36 = vpop.xlane.xlu0 %1330 }
 0x472   :  { %1693 = vst.msk [vmem:[#allocation5 + $0x18] sm:$0xff] %vm91_vm0, %v1677_v46  ;;  %v1369_v59 = vadd.f32 %v1331_v36, %v1305_v10 }
 0x473   :  { %v2168_v30 = vpop.eup %2167  ;;  %v1726_v13 = vld [vmem:[#allocation4 + $0x8] sm:$0xff] }
 0x474   :  { %1386 = vst.msk [vmem:[#allocation4 + $0x20] sm:$0xff] %vm316_vm1, %v1369_v59  ;;  %1817 = vperm.xlu1 %2099, %v2168_v30   ;;  %vm1742_vm5 = vcmp.gt.f32.partialorder %v1726_v13, 0.0  ;;  %v1312_v59 = vmul.f32 %v2761_v19, %v1296_v4  ;;  %v1314_v30 = vmul.f32 %v2759_v3, %v1298_v6 }
 0x475   :  { %v1758_v43 = vsel %vm1742_vm5, %v1726_v13, 1.0  ;;  %v1411_v13 = vld [vmem:[#allocation5 + $0x68] sm:$0xff] }
 0x476   :  { %2169 = vrcp.f32 %v1758_v43  ;;  %v1507_v19 = vmul.f32 %v2869_v35, %v1411_v13 }
 0x478   :  { %v1334_v31 = vpop.xlane.xlu2 %1333 }
 0x479   :  { %v1370_v60 = vadd.f32 %v1334_v31, %v1306_v9  ;;  %v1340_v22 = vpop.xlane.xlu0 %1339 }
 0x47a   :  { %v1372_v5 = vadd.f32 %v1340_v22, %v1308_v40  ;;  %v1403_v40 = vld [vmem:[#allocation5 + $0x28] sm:$0xff] }
 0x47b   :  { %1387 = vst.msk [vmem:[#allocation4 + $0x28] sm:$0xff] %vm316_vm1, %v1370_v60  ;;  %v1729_v32 = vld [vmem:[#allocation4 + $0x20] sm:$0xff]  ;;  %v1499_v56 = vmul.f32 %v2858_v24, %v1403_v40  ;;  %v1404_v24 = vld [vmem:[#allocation5 + $0x30] sm:$0xff] }
 0x47c   :  { %v2170_v62 = vpop.eup %2169  ;;  %1389 = vst.msk [vmem:[#allocation4 + $0x38] sm:$0xff] %vm316_vm1, %v1372_v5  ;;  %vm1745_vm6 = vcmp.gt.f32.partialorder %v1729_v32, 0.0 }
 0x47d   :  { %1812 = vperm.xlu0 %2098, %v2170_v62   ;;  %v1761_v50 = vsel %vm1745_vm6, %v1729_v32, 1.0  ;;  %v1310_v32 = vmul.f32 %v2708_v12, %v1294_v63  ;;  %v1299_v62 = vld [vmem:[#allocation4 + $0x70] sm:$0xff] }
 0x47e   :  { %2171 = vrcp.f32 %v1761_v50 }
 0x47f   :  { %v1328_v21 = vpop.xlane.xlu1 %1327 }
 0x480   :  { %v1368_v26 = vadd.f32 %v1328_v21, %v1304_v28  ;;  %v1343_v47 = vpop.xlane.xlu2 %1342 }
 0x481   :  { %v1349_v54 = vpop.xlane.xlu0 %1348  ;;  %v1373_v16 = vadd.f32 %v1343_v47, %v1309_v55 }
 0x482   :  { %1385 = vst.msk [vmem:[#allocation4 + $0x18] sm:$0xff] %vm316_vm1, %v1368_v26  ;;  %v1375_v52 = vadd.f32 %v1349_v54, %v1311_v34  ;;  %v1730_v17 = vld [vmem:[#allocation4 + $0x28] sm:$0xff]  ;;  %v1315_v34 = vmul.f32 %v2768_v7, %v1299_v62  ;;  %v1406_v54 = vld [vmem:[#allocation5 + $0x40] sm:$0xff] }
 0x483   :  { %vm1746_vm7 = vcmp.gt.f32.partialorder %v1730_v17, 0.0  ;;  %v1732_v37 = vld [vmem:[#allocation4 + $0x38] sm:$0xff]  ;;  %1390 = vst.msk [vmem:[#allocation4 + $0x40] sm:$0xff] %vm316_vm1, %v1373_v16 }
 0x484   :  { %v2172_v8 = vpop.eup %2171  ;;  %v1762_v49 = vsel %vm1746_vm7, %v1730_v17, 1.0  ;;  %vm1748_vm8 = vcmp.gt.f32.partialorder %v1732_v37, 0.0  ;;  %1392 = vst.msk [vmem:[#allocation4 + $0x50] sm:$0xff] %vm316_vm1, %v1375_v52  ;;  %v1297_v52 = vld [vmem:[#allocation4 + $0x60] sm:$0xff] }
 0x485   :  { %v1664_v33 = vpop.f32.mrf.mxu3  ;;  %1827 = vperm.xlu0 %2098, %v2172_v8   ;;  %2173 = vrcp.f32 %v1762_v49  ;;  %v1764_v61 = vsel %vm1748_vm8, %v1732_v37, 1.0  ;;  %v1502_v8 = vmul.f32 %v2862_v11, %v1406_v54  ;;  %v1500_v49 = vmul.f32 %v2843_v38, %v1404_v24  ;;  %v1405_v38 = vld [vmem:[#allocation5 + $0x38] sm:$0xff] }
 0x486   :  { %v1686_v23 = vadd.f32 %v1664_v33, %v1506_v15  ;;  %2175 = vrcp.f32 %v1764_v61  ;;  %v1313_v4 = vmul.f32 %v2718_v58, %v1297_v52  ;;  %v1300_v58 = vld [vmem:[#allocation4 + $0x78] sm:$0xff] }
 0x487   :  { %v1337_v46 = vpop.xlane.xlu1 %1336  ;;  %v1590_v29 = vpop.f32.mrf.mxu1 }
 0x488   :  { %1702 = vst.msk [vmem:[#allocation5 + $0x60] sm:$0xff] %vm91_vm0, %v1686_v23  ;;  %v1371_v10 = vadd.f32 %v1337_v46, %v1307_v45  ;;  %v1678_v36 = vadd.f32 %v1590_v29, %v1498_v2  ;;  %v1352_v1 = vpop.xlane.xlu2 %1351 }
 0x489   :  { %v1358_v27 = vpop.xlane.xlu0 %1357  ;;  %v1728_v43 = vld [vmem:[#allocation4 + $0x18] sm:$0xff]  ;;  %v1376_v20 = vadd.f32 %v1352_v1, %v1312_v59 }
 0x48a   :  { %1388 = vst.msk [vmem:[#allocation4 + $0x30] sm:$0xff] %vm316_vm1, %v1371_v10  ;;  %v1378_v9 = vadd.f32 %v1358_v27, %v1314_v30  ;;  %vm1744_vm9 = vcmp.gt.f32.partialorder %v1728_v43, 0.0  ;;  %v1733_v22 = vld [vmem:[#allocation4 + $0x40] sm:$0xff]  ;;  %v1407_v10 = vld [vmem:[#allocation5 + $0x48] sm:$0xff] }
 0x48b   :  { %v2174_v31 = vpop.eup %2173  ;;  %1694 = vst.msk [vmem:[#allocation5 + $0x20] sm:$0xff] %vm91_vm0, %v1678_v36  ;;  %v1760_v60 = vsel %vm1744_vm9, %v1728_v43, 1.0  ;;  %vm1749_vm10 = vcmp.gt.f32.partialorder %v1733_v22, 0.0  ;;  %v1735_v3 = vld [vmem:[#allocation4 + $0x50] sm:$0xff]  ;;  %v1503_v1 = vmul.f32 %v2849_v53, %v1407_v10  ;;  %v1501_v43 = vmul.f32 %v2860_v14, %v1405_v38 }
 0x48c   :  { %v2176_v5 = vpop.eup %2175  ;;  %1393 = vst.msk [vmem:[#allocation4 + $0x58] sm:$0xff] %vm316_vm1, %v1376_v20  ;;  %1832 = vperm.xlu1 %2099, %v2174_v31   ;;  %2177 = vrcp.f32 %v1760_v60  ;;  %v1765_v41 = vsel %vm1749_vm10, %v1733_v22, 1.0  ;;  %vm1751_vm11 = vcmp.gt.f32.partialorder %v1735_v3, 0.0  ;;  %v1408_v53 = vld [vmem:[#allocation5 + $0x50] sm:$0xff] }
 0x48d   :  { %1395 = vst.msk [vmem:[#allocation4 + $0x68] sm:$0xff] %vm316_vm1, %v1378_v9  ;;  %v1666_v51 = vpop.f32.mrf.mxu3  ;;  %1842 = vperm.xlu0 %2098, %v2176_v5   ;;  %2179 = vrcp.f32 %v1765_v41  ;;  %v1767_v35 = vsel %vm1751_vm11, %v1735_v3, 1.0  ;;  %v1316_v9 = vmul.f32 %v2781_v42, %v1300_v58  ;;  %v1412_v5 = vld [vmem:[#allocation5 + $0x70] sm:$0xff] }
 0x48e   :  { %v1687_v50 = vadd.f32 %v1666_v51, %v1507_v19  ;;  %2181 = vrcp.f32 %v1767_v35  ;;  %v1508_v51 = vmul.f32 %v2874_v44, %v1412_v5  ;;  %v1413_v35 = vld [vmem:[#allocation5 + $0x78] sm:$0xff] }
 0x48f   :  { %v1346_v28 = vpop.xlane.xlu1 %1345  ;;  %v1592_v21 = vpop.f32.mrf.mxu1 }
 0x490   :  { %1703 = vst.msk [vmem:[#allocation5 + $0x68] sm:$0xff] %vm91_vm0, %v1687_v50  ;;  %v1374_v26 = vadd.f32 %v1346_v28, %v1310_v32  ;;  %v1679_v55 = vadd.f32 %v1592_v21, %v1499_v56  ;;  %v1361_v48 = vpop.xlane.xlu2 %1360  ;;  %v1504_v32 = vmul.f32 %v2864_v25, %v1408_v53  ;;  %v1509_v25 = vmul.f32 %v2884_v39, %v1413_v35  ;;  %v1791_v39 = vld [vmem:[#allocation5 + $0x10] sm:$0xff] }
 0x491   :  { %v1731_v47 = vld [vmem:[#allocation4 + $0x30] sm:$0xff]  ;;  %v1379_v16 = vadd.f32 %v1361_v48, %v1315_v34  ;;  %v1789_v34 = vld [vmem:[#allocation5] sm:$0xff] }
 0x492   :  { %v2178_v12 = vpop.eup %2177  ;;  %1391 = vst.msk [vmem:[#allocation4 + $0x48] sm:$0xff] %vm316_vm1, %v1374_v26  ;;  %vm1747_vm12 = vcmp.gt.f32.partialorder %v1731_v47, 0.0  ;;  %v1409_v26 = vld [vmem:[#allocation5 + $0x58] sm:$0xff] }
 0x493   :  { %1695 = vst.msk [vmem:[#allocation5 + $0x28] sm:$0xff] %vm91_vm0, %v1679_v55  ;;  %1822 = vperm.xlu2 %2100, %v2178_v12   ;;  %v1763_v17 = vsel %vm1747_vm12, %v1731_v47, 1.0  ;;  %v1736_v57 = vld [vmem:[#allocation4 + $0x58] sm:$0xff]  ;;  %v2180_v18 = vpop.eup %2179  ;;  %v1505_v47 = vmul.f32 %v2866_v0, %v1409_v26 }
 0x494   :  { %1396 = vst.msk [vmem:[#allocation4 + $0x70] sm:$0xff] %vm316_vm1, %v1379_v16  ;;  %2183 = vrcp.f32 %v1763_v17  ;;  %vm1752_vm13 = vcmp.gt.f32.partialorder %v1736_v57, 0.0  ;;  %v1738_v7 = vld [vmem:[#allocation4 + $0x68] sm:$0xff]  ;;  %v2182_v37 = vpop.eup %2181  ;;  %1847 = vperm.xlu1 %2099, %v2180_v18  }
 0x495   :  { %v1768_v15 = vsel %vm1752_vm13, %v1736_v57, 1.0  ;;  %vm1754_vm14 = vcmp.gt.f32.partialorder %v1738_v7, 0.0  ;;  %v1627_v33 = vpop.f32.mrf.mxu2  ;;  %1857 = vperm.xlu0 %2098, %v2182_v37   ;;  %v1792_v37 = vld [vmem:[#allocation5 + $0x18] sm:$0xff] }
 0x496   :  { %2185 = vrcp.f32 %v1768_v15  ;;  %v1770_v6 = vsel %vm1754_vm14, %v1738_v7, 1.0  ;;  %v1682_v61 = vadd.f32 %v1627_v33, %v1502_v8  ;;  %v1790_v15 = vld [vmem:[#allocation5 + $0x8] sm:$0xff] }
 0x497   :  { %v1355_v2 = vpop.xlane.xlu1 %1354  ;;  %v1595_v23 = vpop.f32.mrf.mxu1  ;;  %2187 = vrcp.f32 %v1770_v6  ;;  %v1802_v26 = vld [vmem:[#allocation5 + $0x68] sm:$0xff] }
 0x498   :  { %v1377_v45 = vadd.f32 %v1355_v2, %v1313_v4  ;;  %v1680_v46 = vadd.f32 %v1595_v23, %v1500_v49  ;;  %1698 = vst.msk [vmem:[#allocation5 + $0x40] sm:$0xff] %vm91_vm0, %v1682_v61 }
 0x499   :  { %v1734_v11 = vld [vmem:[#allocation4 + $0x48] sm:$0xff] }
 0x49a   :  { %v2184_v29 = vpop.eup %2183  ;;  %1394 = vst.msk [vmem:[#allocation4 + $0x60] sm:$0xff] %vm316_vm1, %v1377_v45  ;;  %vm1750_vm15 = vcmp.gt.f32.partialorder %v1734_v11, 0.0  ;;  %v1793_v45 = vld [vmem:[#allocation5 + $0x20] sm:$0xff] }
 0x49b   :  { %1696 = vst.msk [vmem:[#allocation5 + $0x30] sm:$0xff] %vm91_vm0, %v1680_v46  ;;  %1837 = vperm.xlu2 %2100, %v2184_v29   ;;  %v1766_v36 = vsel %vm1750_vm15, %v1734_v11, 1.0  ;;  %v1739_v59 = vld [vmem:[#allocation4 + $0x70] sm:$0xff] }
 0x49c   :  { %v2186_v30 = vpop.eup %2185  ;;  %2189 = vrcp.f32 %v1766_v36  ;;  %vm1755_vm2 = vcmp.gt.f32.partialorder %v1739_v59, 0.0 }
 0x49d   :  { %v2188_v13 = vpop.eup %2187  ;;  %1862 = vperm.xlu1 %2099, %v2186_v30   ;;  %v1771_v27 = vsel %vm1755_vm2, %v1739_v59, 1.0  ;;  %v1629_v20 = vpop.f32.mrf.mxu2  ;;  %v1794_v30 = vld [vmem:[#allocation5 + $0x28] sm:$0xff] }
 0x49e   :  { %1872 = vperm.xlu0 %2098, %v2188_v13   ;;  %2191 = vrcp.f32 %v1771_v27  ;;  %v1683_v63 = vadd.f32 %v1629_v20, %v1503_v1 }
 0x49f   :  { %v1364_v31 = vpop.xlane.xlu1 %1363  ;;  %v1597_v40 = vpop.f32.mrf.mxu1  ;;  %v1797_v5 = vld [vmem:[#allocation5 + $0x40] sm:$0xff] }
 0x4a0   :  { %v1380_v60 = vadd.f32 %v1364_v31, %v1316_v9  ;;  %v1681_v22 = vadd.f32 %v1597_v40, %v1501_v43  ;;  %1699 = vst.msk [vmem:[#allocation5 + $0x48] sm:$0xff] %vm91_vm0, %v1683_v63  ;;  %v1801_v31 = vld [vmem:[#allocation5 + $0x60] sm:$0xff] }
 0x4a1   :  { %v1737_v19 = vld [vmem:[#allocation4 + $0x60] sm:$0xff] }
 0x4a2   :  { %v2190_v3 = vpop.eup %2189  ;;  %1397 = vst.msk [vmem:[#allocation4 + $0x78] sm:$0xff] %vm316_vm1, %v1380_v60  ;;  %vm1753_vm3 = vcmp.gt.f32.partialorder %v1737_v19, 0.0  ;;  %v1795_v61 = vld [vmem:[#allocation5 + $0x30] sm:$0xff] }
 0x4a3   :  { %1697 = vst.msk [vmem:[#allocation5 + $0x38] sm:$0xff] %vm91_vm0, %v1681_v22  ;;  %1852 = vperm.xlu2 %2100, %v2190_v3   ;;  %v1769_v14 = vsel %vm1753_vm3, %v1737_v19, 1.0 }
 0x4a4   :  { %v2192_v42 = vpop.eup %2191  ;;  %2193 = vrcp.f32 %v1769_v14 }
 0x4a5   :  { %1877 = vperm.xlu1 %2099, %v2192_v42   ;;  %v1669_v62 = vpop.f32.mrf.mxu3  ;;  %v1632_v41 = vpop.f32.mrf.mxu2 }
 0x4a6   :  { %v1688_v56 = vadd.f32 %v1669_v62, %v1508_v51  ;;  %v1684_v50 = vadd.f32 %v1632_v41, %v1504_v32 }
 0x4a7   :  { %v1798_v38 = vld [vmem:[#allocation5 + $0x48] sm:$0xff] }
 0x4a8   :  { %1704 = vst.msk [vmem:[#allocation5 + $0x70] sm:$0xff] %vm91_vm0, %v1688_v56 }
 0x4a9   :  { %1700 = vst.msk [vmem:[#allocation5 + $0x50] sm:$0xff] %vm91_vm0, %v1684_v50  ;;  %v1740_v28 = vld [vmem:[#allocation4 + $0x78] sm:$0xff] }
 0x4aa   :  { %v2194_v21 = vpop.eup %2193  ;;  %v1808_v55 = vpop.permute.xlu2 %1807  ;;  %vm1756_vm1 = vcmp.gt.f32.partialorder %v1740_v28, 0.0  ;;  %v1796_v1 = vld [vmem:[#allocation5 + $0x38] sm:$0xff] }
 0x4ab   :  { %v1885_v44 = vmul.f32 %v1808_v55, %v1789_v34  ;;  %1867 = vperm.xlu2 %2100, %v2194_v21   ;;  %v1772_v48 = vsel %vm1756_vm1, %v1740_v28, 1.0 }
 0x4ac   :  { %2195 = vrcp.f32 %v1772_v48 }
 0x4ad   :  { %v1901_v12 = vpack.c.bf16 %v1885_v44, %v1885_v44  ;;  %v1671_v54 = vpop.f32.mrf.mxu3  ;;  %v1634_v16 = vpop.f32.mrf.mxu2 }
 0x4ae   :  { %v1689_v24 = vadd.f32 %v1671_v54, %v1509_v25  ;;  %v1685_v52 = vadd.f32 %v1634_v16, %v1505_v47 }
 0x4af   :  { %1918 = vst.msk [vmem:[%s3003_s5] sm:$0xf] %vm1917_vm4, %v1901_v12  ;;  %v1803_v47 = vld [vmem:[#allocation5 + $0x70] sm:$0xff] }
 0x4b0   :  { %1705 = vst.msk [vmem:[#allocation5 + $0x78] sm:$0xff] %vm91_vm0, %v1689_v24  ;;  %v1799_v53 = vld [vmem:[#allocation5 + $0x50] sm:$0xff] }
 0x4b1   :  { %1701 = vst.msk [vmem:[#allocation5 + $0x58] sm:$0xff] %vm91_vm0, %v1685_v52 }
 0x4b2   :  { %v2196_v17 = vpop.eup %2195 }
 0x4b3   :  { %1882 = vperm.xlu2 %2100, %v2196_v17  }
 0x4b7   :  { %v1804_v62 = vld [vmem:[#allocation5 + $0x78] sm:$0xff] }
 0x4b8   :  { %v1800_v35 = vld [vmem:[#allocation5 + $0x58] sm:$0xff] }
 0x4e6   :  { %v1818_v57 = vpop.permute.xlu1 %1817 }
 0x4e7   :  { %v1887_v18 = vmul.f32 %v1818_v57, %v1791_v39 }
 0x4e9   :  { %v1903_v0 = vpack.c.bf16 %v1887_v18, %v1887_v18 }
 0x4eb   :  { %1920 = vst.msk [vmem:[%s3003_s5 + $0x8] sm:$0xf] %vm1917_vm4, %v1903_v0 }
 0x4ed   :  { %v1823_v7 = vpop.permute.xlu2 %1822 }
 0x4ee   :  { %v1888_v8 = vmul.f32 %v1823_v7, %v1792_v37 }
 0x4ef   :  { %v1813_v49 = vpop.permute.xlu0 %1812 }
 0x4f0   :  { %v1904_v33 = vpack.c.bf16 %v1888_v8, %v1888_v8  ;;  %v1886_v4 = vmul.f32 %v1813_v49, %v1790_v15 }
 0x4f2   :  { %1921 = vst.msk [vmem:[%s3003_s5 + $0xc] sm:$0xf] %vm1917_vm4, %v1904_v33  ;;  %v1902_v6 = vpack.c.bf16 %v1886_v4, %v1886_v4 }
 0x4f4   :  { %1919 = vst.msk [vmem:[%s3003_s5 + $0x4] sm:$0xf] %vm1917_vm4, %v1902_v6 }
 0x4f5   :  { %v1838_v2 = vpop.permute.xlu2 %1837 }
 0x4f6   :  { %v1891_v23 = vmul.f32 %v1838_v2, %v1795_v61 }
 0x4f7   :  { %v1828_v46 = vpop.permute.xlu0 %1827 }
 0x4f8   :  { %v1907_v11 = vpack.c.bf16 %v1891_v23, %v1891_v23  ;;  %v1889_v29 = vmul.f32 %v1828_v46, %v1793_v45 }
 0x4fa   :  { %1924 = vst.msk [vmem:[%s3003_s5 + $0x18] sm:$0xf] %vm1917_vm4, %v1907_v11  ;;  %v1905_v10 = vpack.c.bf16 %v1889_v29, %v1889_v29 }
 0x4fc   :  { %1922 = vst.msk [vmem:[%s3003_s5 + $0x10] sm:$0xf] %vm1917_vm4, %v1905_v10 }
 0x4fd   :  { %v1853_v58 = vpop.permute.xlu2 %1852 }
 0x4fe   :  { %v1894_v36 = vmul.f32 %v1853_v58, %v1798_v38  ;;  %v1833_v59 = vpop.permute.xlu1 %1832 }
 0x4ff   :  { %v1890_v13 = vmul.f32 %v1833_v59, %v1794_v30  ;;  %v1843_v27 = vpop.permute.xlu0 %1842 }
 0x500   :  { %v1910_v43 = vpack.c.bf16 %v1894_v36, %v1894_v36  ;;  %v1892_v20 = vmul.f32 %v1843_v27, %v1796_v1 }
 0x501   :  { %v1906_v9 = vpack.c.bf16 %v1890_v13, %v1890_v13 }
 0x502   :  { %1927 = vst.msk [vmem:[%s3003_s5 + $0x24] sm:$0xf] %vm1917_vm4, %v1910_v43  ;;  %v1908_v63 = vpack.c.bf16 %v1892_v20, %v1892_v20 }
 0x503   :  { %1923 = vst.msk [vmem:[%s3003_s5 + $0x14] sm:$0xf] %vm1917_vm4, %v1906_v9 }
 0x504   :  { %1925 = vst.msk [vmem:[%s3003_s5 + $0x1c] sm:$0xf] %vm1917_vm4, %v1908_v63 }
 0x505   :  { %v1868_v40 = vpop.permute.xlu2 %1867 }
 0x506   :  { %v1897_v60 = vmul.f32 %v1868_v40, %v1801_v31  ;;  %v1848_v22 = vpop.permute.xlu1 %1847 }
 0x507   :  { %v1893_v3 = vmul.f32 %v1848_v22, %v1797_v5  ;;  %v1858_v14 = vpop.permute.xlu0 %1857 }
 0x508   :  { %v1913_v19 = vpack.c.bf16 %v1897_v60, %v1897_v60  ;;  %v1895_v42 = vmul.f32 %v1858_v14, %v1799_v53 }
 0x509   :  { %v1909_v51 = vpack.c.bf16 %v1893_v3, %v1893_v3 }
 0x50a   :  { %1930 = vst.msk [vmem:[%s3003_s5 + $0x30] sm:$0xf] %vm1917_vm4, %v1913_v19  ;;  %v1911_v32 = vpack.c.bf16 %v1895_v42, %v1895_v42 }
 0x50b   :  { %1926 = vst.msk [vmem:[%s3003_s5 + $0x20] sm:$0xf] %vm1917_vm4, %v1909_v51 }
 0x50c   :  { %1928 = vst.msk [vmem:[%s3003_s5 + $0x28] sm:$0xf] %vm1917_vm4, %v1911_v32 }
 0x50d   :  { %v1883_v41 = vpop.permute.xlu2 %1882 }
 0x50e   :  { %v1900_v56 = vmul.f32 %v1883_v41, %v1804_v62 }
 0x50f   :  { %v1863_v50 = vpop.permute.xlu1 %1862 }
 0x510   :  { %v1916_v28 = vpack.c.bf16 %v1900_v56, %v1900_v56  ;;  %v1896_v21 = vmul.f32 %v1863_v50, %v1800_v35  ;;  %v1873_v55 = vpop.permute.xlu0 %1872 }
 0x511   :  { %v1898_v34 = vmul.f32 %v1873_v55, %v1802_v26 }
 0x512   :  { %1933 = vst.msk [vmem:[%s3003_s5 + $0x3c] sm:$0xf] %vm1917_vm4, %v1916_v28  ;;  %v1912_v44 = vpack.c.bf16 %v1896_v21, %v1896_v21 }
 0x513   :  { %v1914_v48 = vpack.c.bf16 %v1898_v34, %v1898_v34 }
 0x514   :  { %1929 = vst.msk [vmem:[%s3003_s5 + $0x2c] sm:$0xf] %vm1917_vm4, %v1912_v44 }
 0x515   :  { %1931 = vst.msk [vmem:[%s3003_s5 + $0x34] sm:$0xf] %vm1917_vm4, %v1914_v48 }
 0x517   :  { %v1878_v25 = vpop.permute.xlu1 %1877 }
 0x518   :  { %v1899_v12 = vmul.f32 %v1878_v25, %v1803_v47 }
 0x51a   :  { %v1915_v54 = vpack.c.bf16 %v1899_v12, %v1899_v12 }
 0x51c   :  { %1932 = vst.msk [vmem:[%s3003_s5 + $0x38] sm:$0xf] %vm1917_vm4, %v1915_v54 }

</bundles_post_ra>
